<compile_context>
chip_gen: v5e
topology: v5e:2x2
jax: 0.10.0
libtpu: 0.0.40
codegen_flags: <defaults>
</compile_context>

<pallas_src>
import jax
import jax.numpy as jnp
from jax.experimental import pallas as pl
from jax.experimental.pallas import tpu as pltpu


PARAM_ORDER = (
    "w_f0", "b_f0", "w_rhy", "b_rhy", "w_spk", "b_spk",
    "ln1_g", "ln1_b", "wq", "bq", "wk", "bk", "wv", "bv", "wo", "bo",
    "ln2_g", "ln2_b", "w_ffn1", "b_ffn1", "w_ffn2", "b_ffn2",
    "w_c0", "b_c0", "g_c0", "be_c0", "w_c1", "b_c1", "g_c1", "be_c1",
    "w_out", "b_out",
)


# ---------------------------------------------------------------------------
# Fused kernel: one grid step == one batch sample, everything VMEM-resident.
# ---------------------------------------------------------------------------
def rhythm_predictor_kernel(f0_ref, spenv_ref, spk_ref, *refs):
    (w_f0, b_f0, w_rhy, b_rhy, w_spk, b_spk,
     ln1_g, ln1_b,
     wq, bq, wk, bk, wv, bv, wo, bo,
     ln2_g, ln2_b,
     w_ffn1, b_ffn1, w_ffn2, b_ffn2,
     w_c0, b_c0, g_c0, be_c0,
     w_c1, b_c1, g_c1, be_c1,
     w_out, b_out,
     o_ref, pad_scratch) = refs

    H = w_f0.shape[1]

    def linear(x, w_r, b_r):
        return jnp.dot(x, w_r[...], preferred_element_type=jnp.float32) + b_r[...]

    def layer_norm(x, g_r, b_r, eps=1e-5):
        # centered two-pass (numerically stable), applied over the channel dim
        mu = jnp.mean(x, axis=-1, keepdims=True)
        xc = x - mu
        var = jnp.mean(xc * xc, axis=-1, keepdims=True)
        return xc * jax.lax.rsqrt(var + eps) * g_r[...] + b_r[...]

    def conv1d_same(x, w_r, b_r):
        # x: (T, Cin) value; w_r: (K, Cin, Cout) ref; b_r: (1, Cout) ref.
        # 'SAME' padding built in VMEM scratch (zero halo rows) — no jnp.pad,
        # no HBM traffic. Accumulator is initialized with tap-0 dot + bias.
        T, Cin = x.shape
        K = w_r.shape[0]
        pad = (K - 1) // 2
        Tp = T + K - 1
        pad_scratch[0:Tp, :] = jnp.zeros((Tp, Cin), jnp.float32)
        pad_scratch[pad:pad + T, :] = x
        acc = jnp.dot(pad_scratch[0:T, :], w_r[0],
                      preferred_element_type=jnp.float32) + b_r[...]
        for k in range(1, K):
            acc = acc + jnp.dot(pad_scratch[k:k + T, :], w_r[k],
                                preferred_element_type=jnp.float32)
        return acc

    # ---- input projections (Linear / Identity replaced by Linear here) -----
    f0_h = linear(f0_ref[0], w_f0, b_f0)          # (Tq, H)
    kv_h = linear(spenv_ref[0], w_rhy, b_rhy)     # (Tkv, H)
    spk_h = linear(spk_ref[0], w_spk, b_spk)      # (1, H)

    # ---- crossformer block: pre-LN single-head cross-attention -------------
    xq = layer_norm(f0_h, ln1_g, ln1_b)
    q_m = linear(xq, wq, bq)                      # (Tq, H)
    k_m = linear(kv_h, wk, bk)                    # (Tkv, H)
    v_m = linear(kv_h, wv, bv)                    # (Tkv, H)
    s = jax.lax.dot_general(q_m, k_m, (((1,), (1,)), ((), ())),
                            preferred_element_type=jnp.float32)  # (Tq, Tkv)
    s = s * (H ** -0.5)
    s = s - jnp.max(s, axis=-1, keepdims=True)
    p = jnp.exp(s)
    p = p / jnp.sum(p, axis=-1, keepdims=True)
    attn = jnp.dot(p, v_m, preferred_element_type=jnp.float32)   # (Tq, H)
    x = f0_h + linear(attn, wo, bo)

    # ---- crossformer FFN: Conv1d(k=ffn_kernel) -> ReLU -> Linear ------------
    y = layer_norm(x, ln2_g, ln2_b)
    h1 = jnp.maximum(conv1d_same(y, w_ffn1, b_ffn1), 0.0)        # (Tq, 4H), lane-dense
    x = x + (jnp.dot(h1, w_ffn2[...], preferred_element_type=jnp.float32)
             + b_ffn2[...])

    # ---- add projected speaker embedding (broadcast over time) -------------
    x = x + spk_h

    # ---- prediction conv stack: Pad+Conv1d -> ReLU -> LayerNorm -> Dropout --
    for (w_c, b_c, g_c, be_c) in ((w_c0, b_c0, g_c0, be_c0),
                                  (w_c1, b_c1, g_c1, be_c1)):
        c = jnp.maximum(conv1d_same(x, w_c, b_c), 0.0)
        x = layer_norm(c, g_c, be_c)
        # Dropout is identity at inference.

    # ---- output projection (only HBM write of the whole module) ------------
    o_ref[0] = (jnp.dot(x, w_out[...], preferred_element_type=jnp.float32)
                + b_out[...]).astype(o_ref.dtype)


# ---------------------------------------------------------------------------
# Wrapper: single pallas_call, batch grid is parallel (feeds v7x's 2nd core).
# ---------------------------------------------------------------------------
def rhythm_predictor_forward(spenv, f0, spk_embed, params):
    B, Tq, f0_in = f0.shape
    _, Tkv, rhy_in = spenv.shape
    H = params["w_f0"].shape[1]
    K_ffn = params["w_ffn1"].shape[0]
    out_size = params["w_out"].shape[1]

    spk3 = spk_embed.reshape(B, 1, -1)            # keep last two dims full-extent
    flat = [params[name] for name in PARAM_ORDER]

    def rep_spec(a):
        nd = a.ndim
        return pl.BlockSpec(a.shape, lambda i, nd=nd: (0,) * nd)

    in_specs = [
        pl.BlockSpec((1, Tq, f0_in), lambda i: (i, 0, 0)),
        pl.BlockSpec((1, Tkv, rhy_in), lambda i: (i, 0, 0)),
        pl.BlockSpec((1, 1, spk3.shape[2]), lambda i: (i, 0, 0)),
    ] + [rep_spec(a) for a in flat]

    return pl.pallas_call(
        rhythm_predictor_kernel,
        out_shape=jax.ShapeDtypeStruct((B, Tq, out_size), jnp.float32),
        grid=(B,),
        in_specs=in_specs,
        out_specs=pl.BlockSpec((1, Tq, out_size), lambda i: (i, 0, 0)),
        scratch_shapes=[pltpu.VMEM((Tq + K_ffn - 1, H), jnp.float32)],
        compiler_params=pltpu.CompilerParams(
            dimension_semantics=("parallel",),
            vmem_limit_bytes=32 * 1024 * 1024),
    )(f0, spenv, spk3, *flat)


# ---------------------------------------------------------------------------
# Pure-JAX reference (same math, batched) for correctness checking.
# ---------------------------------------------------------------------------
def ref_forward(spenv, f0, spk_embed, params):
    p = params
    H = p["w_f0"].shape[1]

    def linear(x, w, b):
        return jnp.dot(x, w) + b

    def layer_norm(x, g, b, eps=1e-5):
        mu = x.mean(-1, keepdims=True)
        xc = x - mu
        var = (xc * xc).mean(-1, keepdims=True)
        return xc / jnp.sqrt(var + eps) * g + b

    def conv1d_same(x, w, b):
        K = w.shape[0]
        pad = (K - 1) // 2
        T = x.shape[1]
        xp = jnp.pad(x, ((0, 0), (pad, pad), (0, 0)))
        out = jnp.zeros(x.shape[:2] + (w.shape[2],), jnp.float32) + b
        for k in range(K):
            out = out + jnp.einsum("btc,cd->btd", xp[:, k:k + T, :], w[k])
        return out

    f0_h = linear(f0, p["w_f0"], p["b_f0"])
    kv_h = linear(spenv, p["w_rhy"], p["b_rhy"])
    spk_h = linear(spk_embed, p["w_spk"], p["b_spk"])[:, None, :]

    xq = layer_norm(f0_h, p["ln1_g"], p["ln1_b"])
    q = linear(xq, p["wq"], p["bq"])
    k = linear(kv_h, p["wk"], p["bk"])
    v = linear(kv_h, p["wv"], p["bv"])
    s = jnp.einsum("bqd,bkd->bqk", q, k) * (H ** -0.5)
    attn = jnp.einsum("bqk,bkd->bqd", jax.nn.softmax(s, axis=-1), v)
    x = f0_h + linear(attn, p["wo"], p["bo"])

    y = layer_norm(x, p["ln2_g"], p["ln2_b"])
    h1 = jnp.maximum(conv1d_same(y, p["w_ffn1"], p["b_ffn1"]), 0.0)
    x = x + linear(h1, p["w_ffn2"], p["b_ffn2"])

    x = x + spk_h

    for i in range(2):
        c = jnp.maximum(conv1d_same(x, p[f"w_c{i}"], p[f"b_c{i}"]), 0.0)
        x = layer_norm(c, p[f"g_c{i}"], p[f"be_c{i}"])

    return linear(x, p["w_out"], p["b_out"])


# ---------------------------------------------------------------------------
# Deterministic parameter construction
# ---------------------------------------------------------------------------
def init_params(key, f0_in, rhy_in, spk_in, hidden, out_size,
                ffn_kernel, pred_kernel, pred_layers=2):
    ff = 4 * hidden
    state = {"key": key}

    def nxt():
        state["key"], sub = jax.random.split(state["key"])
        return sub

    def lin(din, dout):
        s = 1.0 / jnp.sqrt(jnp.float32(din))
        w = jax.random.uniform(nxt(), (din, dout), jnp.float32, -1.0, 1.0) * s
        b = jax.random.uniform(nxt(), (1, dout), jnp.float32, -1.0, 1.0) * s
        return w, b

    def conv(kk, cin, cout):
        s = 1.0 / jnp.sqrt(jnp.float32(cin * kk))
        w = jax.random.uniform(nxt(), (kk, cin, cout), jnp.float32, -1.0, 1.0) * s
        b = jax.random.uniform(nxt(), (1, cout), jnp.float32, -1.0, 1.0) * s
        return w, b

    def ln(d):
        g = 1.0 + 0.1 * jax.random.normal(nxt(), (1, d), jnp.float32)
        b = 0.1 * jax.random.normal(nxt(), (1, d), jnp.float32)
        return g, b

    p = {}
    p["w_f0"], p["b_f0"] = lin(f0_in, hidden)
    p["w_rhy"], p["b_rhy"] = lin(rhy_in, hidden)
    p["w_spk"], p["b_spk"] = lin(spk_in, hidden)
    p["ln1_g"], p["ln1_b"] = ln(hidden)
    p["wq"], p["bq"] = lin(hidden, hidden)
    p["wk"], p["bk"] = lin(hidden, hidden)
    p["wv"], p["bv"] = lin(hidden, hidden)
    p["wo"], p["bo"] = lin(hidden, hidden)
    p["ln2_g"], p["ln2_b"] = ln(hidden)
    p["w_ffn1"], p["b_ffn1"] = conv(ffn_kernel, hidden, ff)
    p["w_ffn2"], p["b_ffn2"] = lin(ff, hidden)
    for i in range(pred_layers):
        p[f"w_c{i}"], p[f"b_c{i}"] = conv(pred_kernel, hidden, hidden)
        p[f"g_c{i}"], p[f"be_c{i}"] = ln(hidden)
    p["w_out"], p["b_out"] = lin(hidden, out_size)
    return p


if __name__ == "__main__":
    # Module hyperparameters (small, consistent with the forward pass)
    F0_IN, RHY_IN, SPK_IN = 16, 16, 24
    HIDDEN, OUT = 32, 80
    FFN_K, PRED_K, PRED_L = 9, 3, 2
    B, TQ, TKV = 2, 16, 12

    key = jax.random.PRNGKey(0)
    key, kf, ks, kk = jax.random.split(key, 4)
    f0 = jax.random.normal(kf, (B, TQ, F0_IN), jnp.float32)       # query stream
    spenv = jax.random.normal(ks, (B, TKV, RHY_IN), jnp.float32)  # key/value stream
    spk = jax.random.normal(kk, (B, SPK_IN), jnp.float32)

    params = init_params(key, F0_IN, RHY_IN, SPK_IN, HIDDEN, OUT,
                         FFN_K, PRED_K, PRED_L)

    out = rhythm_predictor_forward(spenv, f0, spk, params)
    out = jax.block_until_ready(out)

    with jax.default_matmul_precision("highest"):
        ref = jax.block_until_ready(ref_forward(spenv, f0, spk, params))

    assert out.shape == (B, TQ, OUT), out.shape
    err = float(jnp.max(jnp.abs(out - ref)))
    assert err < 2e-3, f"max abs err {err}"

    print("KERNEL_OK")
</pallas_src>

<mosaic_0001>
module attributes {stable_mosaic.version = 11 : i64} {
  func.func @rhythm_predictor_kernel(%arg0: i32, %arg1: memref<1x16x16xf32, #tpu.memory_space<vmem>>, %arg2: memref<1x12x16xf32, #tpu.memory_space<vmem>>, %arg3: memref<1x1x24xf32, #tpu.memory_space<vmem>>, %arg4: memref<16x32xf32, #tpu.memory_space<vmem>>, %arg5: memref<1x32xf32, #tpu.memory_space<vmem>>, %arg6: memref<16x32xf32, #tpu.memory_space<vmem>>, %arg7: memref<1x32xf32, #tpu.memory_space<vmem>>, %arg8: memref<24x32xf32, #tpu.memory_space<vmem>>, %arg9: memref<1x32xf32, #tpu.memory_space<vmem>>, %arg10: memref<1x32xf32, #tpu.memory_space<vmem>>, %arg11: memref<1x32xf32, #tpu.memory_space<vmem>>, %arg12: memref<32x32xf32, #tpu.memory_space<vmem>>, %arg13: memref<1x32xf32, #tpu.memory_space<vmem>>, %arg14: memref<32x32xf32, #tpu.memory_space<vmem>>, %arg15: memref<1x32xf32, #tpu.memory_space<vmem>>, %arg16: memref<32x32xf32, #tpu.memory_space<vmem>>, %arg17: memref<1x32xf32, #tpu.memory_space<vmem>>, %arg18: memref<32x32xf32, #tpu.memory_space<vmem>>, %arg19: memref<1x32xf32, #tpu.memory_space<vmem>>, %arg20: memref<1x32xf32, #tpu.memory_space<vmem>>, %arg21: memref<1x32xf32, #tpu.memory_space<vmem>>, %arg22: memref<9x32x128xf32, #tpu.memory_space<vmem>>, %arg23: memref<1x128xf32, #tpu.memory_space<vmem>>, %arg24: memref<128x32xf32, #tpu.memory_space<vmem>>, %arg25: memref<1x32xf32, #tpu.memory_space<vmem>>, %arg26: memref<3x32x32xf32, #tpu.memory_space<vmem>>, %arg27: memref<1x32xf32, #tpu.memory_space<vmem>>, %arg28: memref<1x32xf32, #tpu.memory_space<vmem>>, %arg29: memref<1x32xf32, #tpu.memory_space<vmem>>, %arg30: memref<3x32x32xf32, #tpu.memory_space<vmem>>, %arg31: memref<1x32xf32, #tpu.memory_space<vmem>>, %arg32: memref<1x32xf32, #tpu.memory_space<vmem>>, %arg33: memref<1x32xf32, #tpu.memory_space<vmem>>, %arg34: memref<32x80xf32, #tpu.memory_space<vmem>>, %arg35: memref<1x80xf32, #tpu.memory_space<vmem>>, %arg36: memref<1x16x80xf32, #tpu.memory_space<vmem>>, %arg37: memref<24x32xf32, #tpu.memory_space<vmem>>) attributes {dimension_semantics = [#tpu.dimension_semantics<parallel>], iteration_bounds = array<i64: 2>, scalar_prefetch = 0 : i64, scratch_operands = 1 : i64, tpu.core_type = #tpu.core_type<tc>, window_params = [{transform_indices = @transform_0, window_bounds = array<i64: 1, 16, 16>}, {transform_indices = @transform_1, window_bounds = array<i64: 1, 12, 16>}, {transform_indices = @transform_2, window_bounds = array<i64: 1, 1, 24>}, {pipeline_mode = #tpu.pipeline_mode<synchronous>, transform_indices = @transform_3, window_bounds = array<i64: 16, 32>}, {pipeline_mode = #tpu.pipeline_mode<synchronous>, transform_indices = @transform_4, window_bounds = array<i64: 1, 32>}, {pipeline_mode = #tpu.pipeline_mode<synchronous>, transform_indices = @transform_5, window_bounds = array<i64: 16, 32>}, {pipeline_mode = #tpu.pipeline_mode<synchronous>, transform_indices = @transform_6, window_bounds = array<i64: 1, 32>}, {pipeline_mode = #tpu.pipeline_mode<synchronous>, transform_indices = @transform_7, window_bounds = array<i64: 24, 32>}, {pipeline_mode = #tpu.pipeline_mode<synchronous>, transform_indices = @transform_8, window_bounds = array<i64: 1, 32>}, {pipeline_mode = #tpu.pipeline_mode<synchronous>, transform_indices = @transform_9, window_bounds = array<i64: 1, 32>}, {pipeline_mode = #tpu.pipeline_mode<synchronous>, transform_indices = @transform_10, window_bounds = array<i64: 1, 32>}, {pipeline_mode = #tpu.pipeline_mode<synchronous>, transform_indices = @transform_11, window_bounds = array<i64: 32, 32>}, {pipeline_mode = #tpu.pipeline_mode<synchronous>, transform_indices = @transform_12, window_bounds = array<i64: 1, 32>}, {pipeline_mode = #tpu.pipeline_mode<synchronous>, transform_indices = @transform_13, window_bounds = array<i64: 32, 32>}, {pipeline_mode = #tpu.pipeline_mode<synchronous>, transform_indices = @transform_14, window_bounds = array<i64: 1, 32>}, {pipeline_mode = #tpu.pipeline_mode<synchronous>, transform_indices = @transform_15, window_bounds = array<i64: 32, 32>}, {pipeline_mode = #tpu.pipeline_mode<synchronous>, transform_indices = @transform_16, window_bounds = array<i64: 1, 32>}, {pipeline_mode = #tpu.pipeline_mode<synchronous>, transform_indices = @transform_17, window_bounds = array<i64: 32, 32>}, {pipeline_mode = #tpu.pipeline_mode<synchronous>, transform_indices = @transform_18, window_bounds = array<i64: 1, 32>}, {pipeline_mode = #tpu.pipeline_mode<synchronous>, transform_indices = @transform_19, window_bounds = array<i64: 1, 32>}, {pipeline_mode = #tpu.pipeline_mode<synchronous>, transform_indices = @transform_20, window_bounds = array<i64: 1, 32>}, {pipeline_mode = #tpu.pipeline_mode<synchronous>, transform_indices = @transform_21, window_bounds = array<i64: 9, 32, 128>}, {pipeline_mode = #tpu.pipeline_mode<synchronous>, transform_indices = @transform_22, window_bounds = array<i64: 1, 128>}, {pipeline_mode = #tpu.pipeline_mode<synchronous>, transform_indices = @transform_23, window_bounds = array<i64: 128, 32>}, {pipeline_mode = #tpu.pipeline_mode<synchronous>, transform_indices = @transform_24, window_bounds = array<i64: 1, 32>}, {pipeline_mode = #tpu.pipeline_mode<synchronous>, transform_indices = @transform_25, window_bounds = array<i64: 3, 32, 32>}, {pipeline_mode = #tpu.pipeline_mode<synchronous>, transform_indices = @transform_26, window_bounds = array<i64: 1, 32>}, {pipeline_mode = #tpu.pipeline_mode<synchronous>, transform_indices = @transform_27, window_bounds = array<i64: 1, 32>}, {pipeline_mode = #tpu.pipeline_mode<synchronous>, transform_indices = @transform_28, window_bounds = array<i64: 1, 32>}, {pipeline_mode = #tpu.pipeline_mode<synchronous>, transform_indices = @transform_29, window_bounds = array<i64: 3, 32, 32>}, {pipeline_mode = #tpu.pipeline_mode<synchronous>, transform_indices = @transform_30, window_bounds = array<i64: 1, 32>}, {pipeline_mode = #tpu.pipeline_mode<synchronous>, transform_indices = @transform_31, window_bounds = array<i64: 1, 32>}, {pipeline_mode = #tpu.pipeline_mode<synchronous>, transform_indices = @transform_32, window_bounds = array<i64: 1, 32>}, {pipeline_mode = #tpu.pipeline_mode<synchronous>, transform_indices = @transform_33, window_bounds = array<i64: 32, 80>}, {pipeline_mode = #tpu.pipeline_mode<synchronous>, transform_indices = @transform_34, window_bounds = array<i64: 1, 80>}, {transform_indices = @transform_35, window_bounds = array<i64: 1, 16, 80>}]} {
    %c0 = arith.constant 0 : index
    %c0_0 = arith.constant 0 : index
    %c0_1 = arith.constant 0 : index
    %0 = vector.load %arg1[%c0, %c0_0, %c0_1] : memref<1x16x16xf32, #tpu.memory_space<vmem>>, vector<1x16x16xf32>
    %1 = vector.shape_cast %0 : vector<1x16x16xf32> to vector<16x16xf32>
    %c0_2 = arith.constant 0 : index
    %c0_3 = arith.constant 0 : index
    %2 = vector.load %arg4[%c0_2, %c0_3] : memref<16x32xf32, #tpu.memory_space<vmem>>, vector<16x32xf32>
    %cst = arith.constant dense<0.000000e+00> : vector<16x32xf32>
    %3 = tpu.matmul %1, %2, %cst {dimension_numbers = #tpu.dot_dimension_numbers<[1], [0], [0], [1], [0, 0, 1, 1], [], []>} : vector<16x16xf32>, vector<16x32xf32>, vector<16x32xf32> -> vector<16x32xf32>
    %c0_4 = arith.constant 0 : index
    %c0_5 = arith.constant 0 : index
    %4 = vector.load %arg5[%c0_4, %c0_5] : memref<1x32xf32, #tpu.memory_space<vmem>>, vector<1x32xf32>
    %5 = vector.broadcast %4 : vector<1x32xf32> to vector<16x32xf32>
    %6 = arith.addf %3, %5 : vector<16x32xf32>
    %c0_6 = arith.constant 0 : index
    %c0_7 = arith.constant 0 : index
    %c0_8 = arith.constant 0 : index
    %7 = vector.load %arg2[%c0_6, %c0_7, %c0_8] : memref<1x12x16xf32, #tpu.memory_space<vmem>>, vector<1x12x16xf32>
    %8 = vector.shape_cast %7 : vector<1x12x16xf32> to vector<12x16xf32>
    %c0_9 = arith.constant 0 : index
    %c0_10 = arith.constant 0 : index
    %9 = vector.load %arg6[%c0_9, %c0_10] : memref<16x32xf32, #tpu.memory_space<vmem>>, vector<16x32xf32>
    %cst_11 = arith.constant dense<0.000000e+00> : vector<12x32xf32>
    %10 = tpu.matmul %8, %9, %cst_11 {dimension_numbers = #tpu.dot_dimension_numbers<[1], [0], [0], [1], [0, 0, 1, 1], [], []>} : vector<12x16xf32>, vector<16x32xf32>, vector<12x32xf32> -> vector<12x32xf32>
    %c0_12 = arith.constant 0 : index
    %c0_13 = arith.constant 0 : index
    %11 = vector.load %arg7[%c0_12, %c0_13] : memref<1x32xf32, #tpu.memory_space<vmem>>, vector<1x32xf32>
    %12 = vector.broadcast %11 : vector<1x32xf32> to vector<12x32xf32>
    %13 = arith.addf %10, %12 : vector<12x32xf32>
    %c0_14 = arith.constant 0 : index
    %c0_15 = arith.constant 0 : index
    %c0_16 = arith.constant 0 : index
    %14 = vector.load %arg3[%c0_14, %c0_15, %c0_16] : memref<1x1x24xf32, #tpu.memory_space<vmem>>, vector<1x1x24xf32>
    %15 = vector.shape_cast %14 : vector<1x1x24xf32> to vector<1x24xf32>
    %c0_17 = arith.constant 0 : index
    %c0_18 = arith.constant 0 : index
    %16 = vector.load %arg8[%c0_17, %c0_18] : memref<24x32xf32, #tpu.memory_space<vmem>>, vector<24x32xf32>
    %cst_19 = arith.constant dense<0.000000e+00> : vector<1x32xf32>
    %17 = tpu.matmul %15, %16, %cst_19 {dimension_numbers = #tpu.dot_dimension_numbers<[1], [0], [0], [1], [0, 0, 1, 1], [], []>} : vector<1x24xf32>, vector<24x32xf32>, vector<1x32xf32> -> vector<1x32xf32>
    %c0_20 = arith.constant 0 : index
    %c0_21 = arith.constant 0 : index
    %18 = vector.load %arg9[%c0_20, %c0_21] : memref<1x32xf32, #tpu.memory_space<vmem>>, vector<1x32xf32>
    %19 = arith.addf %17, %18 : vector<1x32xf32>
    %cst_22 = arith.constant dense<0.000000e+00> : vector<16xf32>
    %20 = vector.multi_reduction <add>, %6, %cst_22 [1] : vector<16x32xf32> to vector<16xf32>
    %21 = vector.shape_cast %20 : vector<16xf32> to vector<16x1xf32>
    %cst_23 = arith.constant 3.200000e+01 : f32
    %22 = vector.broadcast %cst_23 : f32 to vector<16x1xf32>
    %23 = arith.divf %21, %22 : vector<16x1xf32>
    %24 = vector.broadcast %23 : vector<16x1xf32> to vector<16x32xf32>
    %25 = arith.subf %6, %24 : vector<16x32xf32>
    %26 = arith.mulf %25, %25 : vector<16x32xf32>
    %cst_24 = arith.constant dense<0.000000e+00> : vector<16xf32>
    %27 = vector.multi_reduction <add>, %26, %cst_24 [1] : vector<16x32xf32> to vector<16xf32>
    %28 = vector.shape_cast %27 : vector<16xf32> to vector<16x1xf32>
    %cst_25 = arith.constant 3.200000e+01 : f32
    %29 = vector.broadcast %cst_25 : f32 to vector<16x1xf32>
    %30 = arith.divf %28, %29 : vector<16x1xf32>
    %cst_26 = arith.constant 9.99999974E-6 : f32
    %31 = vector.broadcast %cst_26 : f32 to vector<16x1xf32>
    %32 = arith.addf %30, %31 : vector<16x1xf32>
    %33 = math.rsqrt %32 : vector<16x1xf32>
    %34 = vector.broadcast %33 : vector<16x1xf32> to vector<16x32xf32>
    %35 = arith.mulf %25, %34 : vector<16x32xf32>
    %c0_27 = arith.constant 0 : index
    %c0_28 = arith.constant 0 : index
    %36 = vector.load %arg10[%c0_27, %c0_28] : memref<1x32xf32, #tpu.memory_space<vmem>>, vector<1x32xf32>
    %37 = vector.broadcast %36 : vector<1x32xf32> to vector<16x32xf32>
    %38 = arith.mulf %35, %37 : vector<16x32xf32>
    %c0_29 = arith.constant 0 : index
    %c0_30 = arith.constant 0 : index
    %39 = vector.load %arg11[%c0_29, %c0_30] : memref<1x32xf32, #tpu.memory_space<vmem>>, vector<1x32xf32>
    %40 = vector.broadcast %39 : vector<1x32xf32> to vector<16x32xf32>
    %41 = arith.addf %38, %40 : vector<16x32xf32>
    %c0_31 = arith.constant 0 : index
    %c0_32 = arith.constant 0 : index
    %42 = vector.load %arg12[%c0_31, %c0_32] : memref<32x32xf32, #tpu.memory_space<vmem>>, vector<32x32xf32>
    %cst_33 = arith.constant dense<0.000000e+00> : vector<16x32xf32>
    %43 = tpu.matmul %41, %42, %cst_33 {dimension_numbers = #tpu.dot_dimension_numbers<[1], [0], [0], [1], [0, 0, 1, 1], [], []>} : vector<16x32xf32>, vector<32x32xf32>, vector<16x32xf32> -> vector<16x32xf32>
    %c0_34 = arith.constant 0 : index
    %c0_35 = arith.constant 0 : index
    %44 = vector.load %arg13[%c0_34, %c0_35] : memref<1x32xf32, #tpu.memory_space<vmem>>, vector<1x32xf32>
    %45 = vector.broadcast %44 : vector<1x32xf32> to vector<16x32xf32>
    %46 = arith.addf %43, %45 : vector<16x32xf32>
    %c0_36 = arith.constant 0 : index
    %c0_37 = arith.constant 0 : index
    %47 = vector.load %arg14[%c0_36, %c0_37] : memref<32x32xf32, #tpu.memory_space<vmem>>, vector<32x32xf32>
    %cst_38 = arith.constant dense<0.000000e+00> : vector<12x32xf32>
    %48 = tpu.matmul %13, %47, %cst_38 {dimension_numbers = #tpu.dot_dimension_numbers<[1], [0], [0], [1], [0, 0, 1, 1], [], []>} : vector<12x32xf32>, vector<32x32xf32>, vector<12x32xf32> -> vector<12x32xf32>
    %c0_39 = arith.constant 0 : index
    %c0_40 = arith.constant 0 : index
    %49 = vector.load %arg15[%c0_39, %c0_40] : memref<1x32xf32, #tpu.memory_space<vmem>>, vector<1x32xf32>
    %50 = vector.broadcast %49 : vector<1x32xf32> to vector<12x32xf32>
    %51 = arith.addf %48, %50 : vector<12x32xf32>
    %c0_41 = arith.constant 0 : index
    %c0_42 = arith.constant 0 : index
    %52 = vector.load %arg16[%c0_41, %c0_42] : memref<32x32xf32, #tpu.memory_space<vmem>>, vector<32x32xf32>
    %cst_43 = arith.constant dense<0.000000e+00> : vector<12x32xf32>
    %53 = tpu.matmul %13, %52, %cst_43 {dimension_numbers = #tpu.dot_dimension_numbers<[1], [0], [0], [1], [0, 0, 1, 1], [], []>} : vector<12x32xf32>, vector<32x32xf32>, vector<12x32xf32> -> vector<12x32xf32>
    %c0_44 = arith.constant 0 : index
    %c0_45 = arith.constant 0 : index
    %54 = vector.load %arg17[%c0_44, %c0_45] : memref<1x32xf32, #tpu.memory_space<vmem>>, vector<1x32xf32>
    %55 = vector.broadcast %54 : vector<1x32xf32> to vector<12x32xf32>
    %56 = arith.addf %53, %55 : vector<12x32xf32>
    %cst_46 = arith.constant dense<0.000000e+00> : vector<16x12xf32>
    %57 = tpu.matmul %46, %51, %cst_46 {dimension_numbers = #tpu.dot_dimension_numbers<[1], [1], [0], [0], [0, 0, 1, 0], [], []>} : vector<16x32xf32>, vector<12x32xf32>, vector<16x12xf32> -> vector<16x12xf32>
    %cst_47 = arith.constant 0.176776692 : f32
    %58 = vector.broadcast %cst_47 : f32 to vector<16x12xf32>
    %59 = arith.mulf %57, %58 : vector<16x12xf32>
    %cst_48 = arith.constant dense<0xFF800000> : vector<16xf32>
    %60 = vector.multi_reduction <maximumf>, %59, %cst_48 [1] : vector<16x12xf32> to vector<16xf32>
    %61 = vector.shape_cast %60 : vector<16xf32> to vector<16x1xf32>
    %62 = vector.broadcast %61 : vector<16x1xf32> to vector<16x12xf32>
    %63 = arith.subf %59, %62 : vector<16x12xf32>
    %64 = math.exp %63 : vector<16x12xf32>
    %cst_49 = arith.constant dense<0.000000e+00> : vector<16xf32>
    %65 = vector.multi_reduction <add>, %64, %cst_49 [1] : vector<16x12xf32> to vector<16xf32>
    %66 = vector.shape_cast %65 : vector<16xf32> to vector<16x1xf32>
    %67 = vector.broadcast %66 : vector<16x1xf32> to vector<16x12xf32>
    %68 = arith.divf %64, %67 : vector<16x12xf32>
    %cst_50 = arith.constant dense<0.000000e+00> : vector<16x32xf32>
    %69 = tpu.matmul %68, %56, %cst_50 {dimension_numbers = #tpu.dot_dimension_numbers<[1], [0], [0], [1], [0, 0, 1, 1], [], []>} : vector<16x12xf32>, vector<12x32xf32>, vector<16x32xf32> -> vector<16x32xf32>
    %c0_51 = arith.constant 0 : index
    %c0_52 = arith.constant 0 : index
    %70 = vector.load %arg18[%c0_51, %c0_52] : memref<32x32xf32, #tpu.memory_space<vmem>>, vector<32x32xf32>
    %cst_53 = arith.constant dense<0.000000e+00> : vector<16x32xf32>
    %71 = tpu.matmul %69, %70, %cst_53 {dimension_numbers = #tpu.dot_dimension_numbers<[1], [0], [0], [1], [0, 0, 1, 1], [], []>} : vector<16x32xf32>, vector<32x32xf32>, vector<16x32xf32> -> vector<16x32xf32>
    %c0_54 = arith.constant 0 : index
    %c0_55 = arith.constant 0 : index
    %72 = vector.load %arg19[%c0_54, %c0_55] : memref<1x32xf32, #tpu.memory_space<vmem>>, vector<1x32xf32>
    %73 = vector.broadcast %72 : vector<1x32xf32> to vector<16x32xf32>
    %74 = arith.addf %71, %73 : vector<16x32xf32>
    %75 = arith.addf %6, %74 : vector<16x32xf32>
    %cst_56 = arith.constant dense<0.000000e+00> : vector<16xf32>
    %76 = vector.multi_reduction <add>, %75, %cst_56 [1] : vector<16x32xf32> to vector<16xf32>
    %77 = vector.shape_cast %76 : vector<16xf32> to vector<16x1xf32>
    %cst_57 = arith.constant 3.200000e+01 : f32
    %78 = vector.broadcast %cst_57 : f32 to vector<16x1xf32>
    %79 = arith.divf %77, %78 : vector<16x1xf32>
    %80 = vector.broadcast %79 : vector<16x1xf32> to vector<16x32xf32>
    %81 = arith.subf %75, %80 : vector<16x32xf32>
    %82 = arith.mulf %81, %81 : vector<16x32xf32>
    %cst_58 = arith.constant dense<0.000000e+00> : vector<16xf32>
    %83 = vector.multi_reduction <add>, %82, %cst_58 [1] : vector<16x32xf32> to vector<16xf32>
    %84 = vector.shape_cast %83 : vector<16xf32> to vector<16x1xf32>
    %cst_59 = arith.constant 3.200000e+01 : f32
    %85 = vector.broadcast %cst_59 : f32 to vector<16x1xf32>
    %86 = arith.divf %84, %85 : vector<16x1xf32>
    %cst_60 = arith.constant 9.99999974E-6 : f32
    %87 = vector.broadcast %cst_60 : f32 to vector<16x1xf32>
    %88 = arith.addf %86, %87 : vector<16x1xf32>
    %89 = math.rsqrt %88 : vector<16x1xf32>
    %90 = vector.broadcast %89 : vector<16x1xf32> to vector<16x32xf32>
    %91 = arith.mulf %81, %90 : vector<16x32xf32>
    %c0_61 = arith.constant 0 : index
    %c0_62 = arith.constant 0 : index
    %92 = vector.load %arg20[%c0_61, %c0_62] : memref<1x32xf32, #tpu.memory_space<vmem>>, vector<1x32xf32>
    %93 = vector.broadcast %92 : vector<1x32xf32> to vector<16x32xf32>
    %94 = arith.mulf %91, %93 : vector<16x32xf32>
    %c0_63 = arith.constant 0 : index
    %c0_64 = arith.constant 0 : index
    %95 = vector.load %arg21[%c0_63, %c0_64] : memref<1x32xf32, #tpu.memory_space<vmem>>, vector<1x32xf32>
    %96 = vector.broadcast %95 : vector<1x32xf32> to vector<16x32xf32>
    %97 = arith.addf %94, %96 : vector<16x32xf32>
    %cst_65 = arith.constant 0.000000e+00 : f32
    %98 = vector.broadcast %cst_65 : f32 to vector<24x32xf32>
    %c0_66 = arith.constant 0 : index
    %c0_67 = arith.constant 0 : index
    %99 = vector.load %arg37[%c0_66, %c0_67] : memref<24x32xf32, #tpu.memory_space<vmem>>, vector<24x32xf32>
    tpu.vector_store %arg37[%c0_66, %c0_67], %98 {strides = array<i32>} : memref<24x32xf32, #tpu.memory_space<vmem>>, vector<24x32xf32>,
    %c4 = arith.constant 4 : index
    %c0_68 = arith.constant 0 : index
    %100 = vector.load %arg37[%c4, %c0_68] : memref<24x32xf32, #tpu.memory_space<vmem>>, vector<16x32xf32>
    tpu.vector_store %arg37[%c4, %c0_68], %97 {strides = array<i32>} : memref<24x32xf32, #tpu.memory_space<vmem>>, vector<16x32xf32>,
    %c0_69 = arith.constant 0 : index
    %c0_70 = arith.constant 0 : index
    %101 = vector.load %arg37[%c0_69, %c0_70] : memref<24x32xf32, #tpu.memory_space<vmem>>, vector<16x32xf32>
    %c0_71 = arith.constant 0 : index
    %c0_72 = arith.constant 0 : index
    %c0_73 = arith.constant 0 : index
    %102 = vector.load %arg22[%c0_71, %c0_72, %c0_73] : memref<9x32x128xf32, #tpu.memory_space<vmem>>, vector<1x32x128xf32>
    %103 = vector.shape_cast %102 : vector<1x32x128xf32> to vector<32x128xf32>
    %cst_74 = arith.constant dense<0.000000e+00> : vector<16x128xf32>
    %104 = tpu.matmul %101, %103, %cst_74 {dimension_numbers = #tpu.dot_dimension_numbers<[1], [0], [0], [1], [0, 0, 1, 1], [], []>} : vector<16x32xf32>, vector<32x128xf32>, vector<16x128xf32> -> vector<16x128xf32>
    %c0_75 = arith.constant 0 : index
    %c0_76 = arith.constant 0 : index
    %105 = vector.load %arg23[%c0_75, %c0_76] : memref<1x128xf32, #tpu.memory_space<vmem>>, vector<1x128xf32>
    %106 = vector.broadcast %105 : vector<1x128xf32> to vector<16x128xf32>
    %107 = arith.addf %104, %106 : vector<16x128xf32>
    %c1 = arith.constant 1 : index
    %c0_77 = arith.constant 0 : index
    %108 = vector.load %arg37[%c1, %c0_77] : memref<24x32xf32, #tpu.memory_space<vmem>>, vector<16x32xf32>
    %c1_78 = arith.constant 1 : index
    %c0_79 = arith.constant 0 : index
    %c0_80 = arith.constant 0 : index
    %109 = vector.load %arg22[%c1_78, %c0_79, %c0_80] : memref<9x32x128xf32, #tpu.memory_space<vmem>>, vector<1x32x128xf32>
    %110 = vector.shape_cast %109 : vector<1x32x128xf32> to vector<32x128xf32>
    %cst_81 = arith.constant dense<0.000000e+00> : vector<16x128xf32>
    %111 = tpu.matmul %108, %110, %cst_81 {dimension_numbers = #tpu.dot_dimension_numbers<[1], [0], [0], [1], [0, 0, 1, 1], [], []>} : vector<16x32xf32>, vector<32x128xf32>, vector<16x128xf32> -> vector<16x128xf32>
    %112 = arith.addf %107, %111 : vector<16x128xf32>
    %c2 = arith.constant 2 : index
    %c0_82 = arith.constant 0 : index
    %113 = vector.load %arg37[%c2, %c0_82] : memref<24x32xf32, #tpu.memory_space<vmem>>, vector<16x32xf32>
    %c2_83 = arith.constant 2 : index
    %c0_84 = arith.constant 0 : index
    %c0_85 = arith.constant 0 : index
    %114 = vector.load %arg22[%c2_83, %c0_84, %c0_85] : memref<9x32x128xf32, #tpu.memory_space<vmem>>, vector<1x32x128xf32>
    %115 = vector.shape_cast %114 : vector<1x32x128xf32> to vector<32x128xf32>
    %cst_86 = arith.constant dense<0.000000e+00> : vector<16x128xf32>
    %116 = tpu.matmul %113, %115, %cst_86 {dimension_numbers = #tpu.dot_dimension_numbers<[1], [0], [0], [1], [0, 0, 1, 1], [], []>} : vector<16x32xf32>, vector<32x128xf32>, vector<16x128xf32> -> vector<16x128xf32>
    %117 = arith.addf %112, %116 : vector<16x128xf32>
    %c3 = arith.constant 3 : index
    %c0_87 = arith.constant 0 : index
    %118 = vector.load %arg37[%c3, %c0_87] : memref<24x32xf32, #tpu.memory_space<vmem>>, vector<16x32xf32>
    %c3_88 = arith.constant 3 : index
    %c0_89 = arith.constant 0 : index
    %c0_90 = arith.constant 0 : index
    %119 = vector.load %arg22[%c3_88, %c0_89, %c0_90] : memref<9x32x128xf32, #tpu.memory_space<vmem>>, vector<1x32x128xf32>
    %120 = vector.shape_cast %119 : vector<1x32x128xf32> to vector<32x128xf32>
    %cst_91 = arith.constant dense<0.000000e+00> : vector<16x128xf32>
    %121 = tpu.matmul %118, %120, %cst_91 {dimension_numbers = #tpu.dot_dimension_numbers<[1], [0], [0], [1], [0, 0, 1, 1], [], []>} : vector<16x32xf32>, vector<32x128xf32>, vector<16x128xf32> -> vector<16x128xf32>
    %122 = arith.addf %117, %121 : vector<16x128xf32>
    %c4_92 = arith.constant 4 : index
    %c0_93 = arith.constant 0 : index
    %123 = vector.load %arg37[%c4_92, %c0_93] : memref<24x32xf32, #tpu.memory_space<vmem>>, vector<16x32xf32>
    %c4_94 = arith.constant 4 : index
    %c0_95 = arith.constant 0 : index
    %c0_96 = arith.constant 0 : index
    %124 = vector.load %arg22[%c4_94, %c0_95, %c0_96] : memref<9x32x128xf32, #tpu.memory_space<vmem>>, vector<1x32x128xf32>
    %125 = vector.shape_cast %124 : vector<1x32x128xf32> to vector<32x128xf32>
    %cst_97 = arith.constant dense<0.000000e+00> : vector<16x128xf32>
    %126 = tpu.matmul %123, %125, %cst_97 {dimension_numbers = #tpu.dot_dimension_numbers<[1], [0], [0], [1], [0, 0, 1, 1], [], []>} : vector<16x32xf32>, vector<32x128xf32>, vector<16x128xf32> -> vector<16x128xf32>
    %127 = arith.addf %122, %126 : vector<16x128xf32>
    %c5 = arith.constant 5 : index
    %c0_98 = arith.constant 0 : index
    %128 = vector.load %arg37[%c5, %c0_98] : memref<24x32xf32, #tpu.memory_space<vmem>>, vector<16x32xf32>
    %c5_99 = arith.constant 5 : index
    %c0_100 = arith.constant 0 : index
    %c0_101 = arith.constant 0 : index
    %129 = vector.load %arg22[%c5_99, %c0_100, %c0_101] : memref<9x32x128xf32, #tpu.memory_space<vmem>>, vector<1x32x128xf32>
    %130 = vector.shape_cast %129 : vector<1x32x128xf32> to vector<32x128xf32>
    %cst_102 = arith.constant dense<0.000000e+00> : vector<16x128xf32>
    %131 = tpu.matmul %128, %130, %cst_102 {dimension_numbers = #tpu.dot_dimension_numbers<[1], [0], [0], [1], [0, 0, 1, 1], [], []>} : vector<16x32xf32>, vector<32x128xf32>, vector<16x128xf32> -> vector<16x128xf32>
    %132 = arith.addf %127, %131 : vector<16x128xf32>
    %c6 = arith.constant 6 : index
    %c0_103 = arith.constant 0 : index
    %133 = vector.load %arg37[%c6, %c0_103] : memref<24x32xf32, #tpu.memory_space<vmem>>, vector<16x32xf32>
    %c6_104 = arith.constant 6 : index
    %c0_105 = arith.constant 0 : index
    %c0_106 = arith.constant 0 : index
    %134 = vector.load %arg22[%c6_104, %c0_105, %c0_106] : memref<9x32x128xf32, #tpu.memory_space<vmem>>, vector<1x32x128xf32>
    %135 = vector.shape_cast %134 : vector<1x32x128xf32> to vector<32x128xf32>
    %cst_107 = arith.constant dense<0.000000e+00> : vector<16x128xf32>
    %136 = tpu.matmul %133, %135, %cst_107 {dimension_numbers = #tpu.dot_dimension_numbers<[1], [0], [0], [1], [0, 0, 1, 1], [], []>} : vector<16x32xf32>, vector<32x128xf32>, vector<16x128xf32> -> vector<16x128xf32>
    %137 = arith.addf %132, %136 : vector<16x128xf32>
    %c7 = arith.constant 7 : index
    %c0_108 = arith.constant 0 : index
    %138 = vector.load %arg37[%c7, %c0_108] : memref<24x32xf32, #tpu.memory_space<vmem>>, vector<16x32xf32>
    %c7_109 = arith.constant 7 : index
    %c0_110 = arith.constant 0 : index
    %c0_111 = arith.constant 0 : index
    %139 = vector.load %arg22[%c7_109, %c0_110, %c0_111] : memref<9x32x128xf32, #tpu.memory_space<vmem>>, vector<1x32x128xf32>
    %140 = vector.shape_cast %139 : vector<1x32x128xf32> to vector<32x128xf32>
    %cst_112 = arith.constant dense<0.000000e+00> : vector<16x128xf32>
    %141 = tpu.matmul %138, %140, %cst_112 {dimension_numbers = #tpu.dot_dimension_numbers<[1], [0], [0], [1], [0, 0, 1, 1], [], []>} : vector<16x32xf32>, vector<32x128xf32>, vector<16x128xf32> -> vector<16x128xf32>
    %142 = arith.addf %137, %141 : vector<16x128xf32>
    %c8 = arith.constant 8 : index
    %c0_113 = arith.constant 0 : index
    %143 = vector.load %arg37[%c8, %c0_113] : memref<24x32xf32, #tpu.memory_space<vmem>>, vector<16x32xf32>
    %c8_114 = arith.constant 8 : index
    %c0_115 = arith.constant 0 : index
    %c0_116 = arith.constant 0 : index
    %144 = vector.load %arg22[%c8_114, %c0_115, %c0_116] : memref<9x32x128xf32, #tpu.memory_space<vmem>>, vector<1x32x128xf32>
    %145 = vector.shape_cast %144 : vector<1x32x128xf32> to vector<32x128xf32>
    %cst_117 = arith.constant dense<0.000000e+00> : vector<16x128xf32>
    %146 = tpu.matmul %143, %145, %cst_117 {dimension_numbers = #tpu.dot_dimension_numbers<[1], [0], [0], [1], [0, 0, 1, 1], [], []>} : vector<16x32xf32>, vector<32x128xf32>, vector<16x128xf32> -> vector<16x128xf32>
    %147 = arith.addf %142, %146 : vector<16x128xf32>
    %cst_118 = arith.constant 0.000000e+00 : f32
    %148 = vector.broadcast %cst_118 : f32 to vector<16x128xf32>
    %149 = arith.maximumf %147, %148 : vector<16x128xf32>
    %c0_119 = arith.constant 0 : index
    %c0_120 = arith.constant 0 : index
    %150 = vector.load %arg24[%c0_119, %c0_120] : memref<128x32xf32, #tpu.memory_space<vmem>>, vector<128x32xf32>
    %cst_121 = arith.constant dense<0.000000e+00> : vector<16x32xf32>
    %151 = tpu.matmul %149, %150, %cst_121 {dimension_numbers = #tpu.dot_dimension_numbers<[1], [0], [0], [1], [0, 0, 1, 1], [], []>} : vector<16x128xf32>, vector<128x32xf32>, vector<16x32xf32> -> vector<16x32xf32>
    %c0_122 = arith.constant 0 : index
    %c0_123 = arith.constant 0 : index
    %152 = vector.load %arg25[%c0_122, %c0_123] : memref<1x32xf32, #tpu.memory_space<vmem>>, vector<1x32xf32>
    %153 = vector.broadcast %152 : vector<1x32xf32> to vector<16x32xf32>
    %154 = arith.addf %151, %153 : vector<16x32xf32>
    %155 = arith.addf %75, %154 : vector<16x32xf32>
    %156 = vector.broadcast %19 : vector<1x32xf32> to vector<16x32xf32>
    %157 = arith.addf %155, %156 : vector<16x32xf32>
    %cst_124 = arith.constant 0.000000e+00 : f32
    %158 = vector.broadcast %cst_124 : f32 to vector<18x32xf32>
    %c0_125 = arith.constant 0 : index
    %c0_126 = arith.constant 0 : index
    %159 = vector.load %arg37[%c0_125, %c0_126] : memref<24x32xf32, #tpu.memory_space<vmem>>, vector<18x32xf32>
    tpu.vector_store %arg37[%c0_125, %c0_126], %158 {strides = array<i32>} : memref<24x32xf32, #tpu.memory_space<vmem>>, vector<18x32xf32>,
    %c1_127 = arith.constant 1 : index
    %c0_128 = arith.constant 0 : index
    %160 = vector.load %arg37[%c1_127, %c0_128] : memref<24x32xf32, #tpu.memory_space<vmem>>, vector<16x32xf32>
    tpu.vector_store %arg37[%c1_127, %c0_128], %157 {strides = array<i32>} : memref<24x32xf32, #tpu.memory_space<vmem>>, vector<16x32xf32>,
    %c0_129 = arith.constant 0 : index
    %c0_130 = arith.constant 0 : index
    %161 = vector.load %arg37[%c0_129, %c0_130] : memref<24x32xf32, #tpu.memory_space<vmem>>, vector<16x32xf32>
    %c0_131 = arith.constant 0 : index
    %c0_132 = arith.constant 0 : index
    %c0_133 = arith.constant 0 : index
    %162 = vector.load %arg26[%c0_131, %c0_132, %c0_133] : memref<3x32x32xf32, #tpu.memory_space<vmem>>, vector<1x32x32xf32>
    %163 = vector.shape_cast %162 : vector<1x32x32xf32> to vector<32x32xf32>
    %cst_134 = arith.constant dense<0.000000e+00> : vector<16x32xf32>
    %164 = tpu.matmul %161, %163, %cst_134 {dimension_numbers = #tpu.dot_dimension_numbers<[1], [0], [0], [1], [0, 0, 1, 1], [], []>} : vector<16x32xf32>, vector<32x32xf32>, vector<16x32xf32> -> vector<16x32xf32>
    %c0_135 = arith.constant 0 : index
    %c0_136 = arith.constant 0 : index
    %165 = vector.load %arg27[%c0_135, %c0_136] : memref<1x32xf32, #tpu.memory_space<vmem>>, vector<1x32xf32>
    %166 = vector.broadcast %165 : vector<1x32xf32> to vector<16x32xf32>
    %167 = arith.addf %164, %166 : vector<16x32xf32>
    %c1_137 = arith.constant 1 : index
    %c0_138 = arith.constant 0 : index
    %168 = vector.load %arg37[%c1_137, %c0_138] : memref<24x32xf32, #tpu.memory_space<vmem>>, vector<16x32xf32>
    %c1_139 = arith.constant 1 : index
    %c0_140 = arith.constant 0 : index
    %c0_141 = arith.constant 0 : index
    %169 = vector.load %arg26[%c1_139, %c0_140, %c0_141] : memref<3x32x32xf32, #tpu.memory_space<vmem>>, vector<1x32x32xf32>
    %170 = vector.shape_cast %169 : vector<1x32x32xf32> to vector<32x32xf32>
    %cst_142 = arith.constant dense<0.000000e+00> : vector<16x32xf32>
    %171 = tpu.matmul %168, %170, %cst_142 {dimension_numbers = #tpu.dot_dimension_numbers<[1], [0], [0], [1], [0, 0, 1, 1], [], []>} : vector<16x32xf32>, vector<32x32xf32>, vector<16x32xf32> -> vector<16x32xf32>
    %172 = arith.addf %167, %171 : vector<16x32xf32>
    %c2_143 = arith.constant 2 : index
    %c0_144 = arith.constant 0 : index
    %173 = vector.load %arg37[%c2_143, %c0_144] : memref<24x32xf32, #tpu.memory_space<vmem>>, vector<16x32xf32>
    %c2_145 = arith.constant 2 : index
    %c0_146 = arith.constant 0 : index
    %c0_147 = arith.constant 0 : index
    %174 = vector.load %arg26[%c2_145, %c0_146, %c0_147] : memref<3x32x32xf32, #tpu.memory_space<vmem>>, vector<1x32x32xf32>
    %175 = vector.shape_cast %174 : vector<1x32x32xf32> to vector<32x32xf32>
    %cst_148 = arith.constant dense<0.000000e+00> : vector<16x32xf32>
    %176 = tpu.matmul %173, %175, %cst_148 {dimension_numbers = #tpu.dot_dimension_numbers<[1], [0], [0], [1], [0, 0, 1, 1], [], []>} : vector<16x32xf32>, vector<32x32xf32>, vector<16x32xf32> -> vector<16x32xf32>
    %177 = arith.addf %172, %176 : vector<16x32xf32>
    %cst_149 = arith.constant 0.000000e+00 : f32
    %178 = vector.broadcast %cst_149 : f32 to vector<16x32xf32>
    %179 = arith.maximumf %177, %178 : vector<16x32xf32>
    %cst_150 = arith.constant dense<0.000000e+00> : vector<16xf32>
    %180 = vector.multi_reduction <add>, %179, %cst_150 [1] : vector<16x32xf32> to vector<16xf32>
    %181 = vector.shape_cast %180 : vector<16xf32> to vector<16x1xf32>
    %cst_151 = arith.constant 3.200000e+01 : f32
    %182 = vector.broadcast %cst_151 : f32 to vector<16x1xf32>
    %183 = arith.divf %181, %182 : vector<16x1xf32>
    %184 = vector.broadcast %183 : vector<16x1xf32> to vector<16x32xf32>
    %185 = arith.subf %179, %184 : vector<16x32xf32>
    %186 = arith.mulf %185, %185 : vector<16x32xf32>
    %cst_152 = arith.constant dense<0.000000e+00> : vector<16xf32>
    %187 = vector.multi_reduction <add>, %186, %cst_152 [1] : vector<16x32xf32> to vector<16xf32>
    %188 = vector.shape_cast %187 : vector<16xf32> to vector<16x1xf32>
    %cst_153 = arith.constant 3.200000e+01 : f32
    %189 = vector.broadcast %cst_153 : f32 to vector<16x1xf32>
    %190 = arith.divf %188, %189 : vector<16x1xf32>
    %cst_154 = arith.constant 9.99999974E-6 : f32
    %191 = vector.broadcast %cst_154 : f32 to vector<16x1xf32>
    %192 = arith.addf %190, %191 : vector<16x1xf32>
    %193 = math.rsqrt %192 : vector<16x1xf32>
    %194 = vector.broadcast %193 : vector<16x1xf32> to vector<16x32xf32>
    %195 = arith.mulf %185, %194 : vector<16x32xf32>
    %c0_155 = arith.constant 0 : index
    %c0_156 = arith.constant 0 : index
    %196 = vector.load %arg28[%c0_155, %c0_156] : memref<1x32xf32, #tpu.memory_space<vmem>>, vector<1x32xf32>
    %197 = vector.broadcast %196 : vector<1x32xf32> to vector<16x32xf32>
    %198 = arith.mulf %195, %197 : vector<16x32xf32>
    %c0_157 = arith.constant 0 : index
    %c0_158 = arith.constant 0 : index
    %199 = vector.load %arg29[%c0_157, %c0_158] : memref<1x32xf32, #tpu.memory_space<vmem>>, vector<1x32xf32>
    %200 = vector.broadcast %199 : vector<1x32xf32> to vector<16x32xf32>
    %201 = arith.addf %198, %200 : vector<16x32xf32>
    %cst_159 = arith.constant 0.000000e+00 : f32
    %202 = vector.broadcast %cst_159 : f32 to vector<18x32xf32>
    %c0_160 = arith.constant 0 : index
    %c0_161 = arith.constant 0 : index
    %203 = vector.load %arg37[%c0_160, %c0_161] : memref<24x32xf32, #tpu.memory_space<vmem>>, vector<18x32xf32>
    tpu.vector_store %arg37[%c0_160, %c0_161], %202 {strides = array<i32>} : memref<24x32xf32, #tpu.memory_space<vmem>>, vector<18x32xf32>,
    %c1_162 = arith.constant 1 : index
    %c0_163 = arith.constant 0 : index
    %204 = vector.load %arg37[%c1_162, %c0_163] : memref<24x32xf32, #tpu.memory_space<vmem>>, vector<16x32xf32>
    tpu.vector_store %arg37[%c1_162, %c0_163], %201 {strides = array<i32>} : memref<24x32xf32, #tpu.memory_space<vmem>>, vector<16x32xf32>,
    %c0_164 = arith.constant 0 : index
    %c0_165 = arith.constant 0 : index
    %205 = vector.load %arg37[%c0_164, %c0_165] : memref<24x32xf32, #tpu.memory_space<vmem>>, vector<16x32xf32>
    %c0_166 = arith.constant 0 : index
    %c0_167 = arith.constant 0 : index
    %c0_168 = arith.constant 0 : index
    %206 = vector.load %arg30[%c0_166, %c0_167, %c0_168] : memref<3x32x32xf32, #tpu.memory_space<vmem>>, vector<1x32x32xf32>
    %207 = vector.shape_cast %206 : vector<1x32x32xf32> to vector<32x32xf32>
    %cst_169 = arith.constant dense<0.000000e+00> : vector<16x32xf32>
    %208 = tpu.matmul %205, %207, %cst_169 {dimension_numbers = #tpu.dot_dimension_numbers<[1], [0], [0], [1], [0, 0, 1, 1], [], []>} : vector<16x32xf32>, vector<32x32xf32>, vector<16x32xf32> -> vector<16x32xf32>
    %c0_170 = arith.constant 0 : index
    %c0_171 = arith.constant 0 : index
    %209 = vector.load %arg31[%c0_170, %c0_171] : memref<1x32xf32, #tpu.memory_space<vmem>>, vector<1x32xf32>
    %210 = vector.broadcast %209 : vector<1x32xf32> to vector<16x32xf32>
    %211 = arith.addf %208, %210 : vector<16x32xf32>
    %c1_172 = arith.constant 1 : index
    %c0_173 = arith.constant 0 : index
    %212 = vector.load %arg37[%c1_172, %c0_173] : memref<24x32xf32, #tpu.memory_space<vmem>>, vector<16x32xf32>
    %c1_174 = arith.constant 1 : index
    %c0_175 = arith.constant 0 : index
    %c0_176 = arith.constant 0 : index
    %213 = vector.load %arg30[%c1_174, %c0_175, %c0_176] : memref<3x32x32xf32, #tpu.memory_space<vmem>>, vector<1x32x32xf32>
    %214 = vector.shape_cast %213 : vector<1x32x32xf32> to vector<32x32xf32>
    %cst_177 = arith.constant dense<0.000000e+00> : vector<16x32xf32>
    %215 = tpu.matmul %212, %214, %cst_177 {dimension_numbers = #tpu.dot_dimension_numbers<[1], [0], [0], [1], [0, 0, 1, 1], [], []>} : vector<16x32xf32>, vector<32x32xf32>, vector<16x32xf32> -> vector<16x32xf32>
    %216 = arith.addf %211, %215 : vector<16x32xf32>
    %c2_178 = arith.constant 2 : index
    %c0_179 = arith.constant 0 : index
    %217 = vector.load %arg37[%c2_178, %c0_179] : memref<24x32xf32, #tpu.memory_space<vmem>>, vector<16x32xf32>
    %c2_180 = arith.constant 2 : index
    %c0_181 = arith.constant 0 : index
    %c0_182 = arith.constant 0 : index
    %218 = vector.load %arg30[%c2_180, %c0_181, %c0_182] : memref<3x32x32xf32, #tpu.memory_space<vmem>>, vector<1x32x32xf32>
    %219 = vector.shape_cast %218 : vector<1x32x32xf32> to vector<32x32xf32>
    %cst_183 = arith.constant dense<0.000000e+00> : vector<16x32xf32>
    %220 = tpu.matmul %217, %219, %cst_183 {dimension_numbers = #tpu.dot_dimension_numbers<[1], [0], [0], [1], [0, 0, 1, 1], [], []>} : vector<16x32xf32>, vector<32x32xf32>, vector<16x32xf32> -> vector<16x32xf32>
    %221 = arith.addf %216, %220 : vector<16x32xf32>
    %cst_184 = arith.constant 0.000000e+00 : f32
    %222 = vector.broadcast %cst_184 : f32 to vector<16x32xf32>
    %223 = arith.maximumf %221, %222 : vector<16x32xf32>
    %cst_185 = arith.constant dense<0.000000e+00> : vector<16xf32>
    %224 = vector.multi_reduction <add>, %223, %cst_185 [1] : vector<16x32xf32> to vector<16xf32>
    %225 = vector.shape_cast %224 : vector<16xf32> to vector<16x1xf32>
    %cst_186 = arith.constant 3.200000e+01 : f32
    %226 = vector.broadcast %cst_186 : f32 to vector<16x1xf32>
    %227 = arith.divf %225, %226 : vector<16x1xf32>
    %228 = vector.broadcast %227 : vector<16x1xf32> to vector<16x32xf32>
    %229 = arith.subf %223, %228 : vector<16x32xf32>
    %230 = arith.mulf %229, %229 : vector<16x32xf32>
    %cst_187 = arith.constant dense<0.000000e+00> : vector<16xf32>
    %231 = vector.multi_reduction <add>, %230, %cst_187 [1] : vector<16x32xf32> to vector<16xf32>
    %232 = vector.shape_cast %231 : vector<16xf32> to vector<16x1xf32>
    %cst_188 = arith.constant 3.200000e+01 : f32
    %233 = vector.broadcast %cst_188 : f32 to vector<16x1xf32>
    %234 = arith.divf %232, %233 : vector<16x1xf32>
    %cst_189 = arith.constant 9.99999974E-6 : f32
    %235 = vector.broadcast %cst_189 : f32 to vector<16x1xf32>
    %236 = arith.addf %234, %235 : vector<16x1xf32>
    %237 = math.rsqrt %236 : vector<16x1xf32>
    %238 = vector.broadcast %237 : vector<16x1xf32> to vector<16x32xf32>
    %239 = arith.mulf %229, %238 : vector<16x32xf32>
    %c0_190 = arith.constant 0 : index
    %c0_191 = arith.constant 0 : index
    %240 = vector.load %arg32[%c0_190, %c0_191] : memref<1x32xf32, #tpu.memory_space<vmem>>, vector<1x32xf32>
    %241 = vector.broadcast %240 : vector<1x32xf32> to vector<16x32xf32>
    %242 = arith.mulf %239, %241 : vector<16x32xf32>
    %c0_192 = arith.constant 0 : index
    %c0_193 = arith.constant 0 : index
    %243 = vector.load %arg33[%c0_192, %c0_193] : memref<1x32xf32, #tpu.memory_space<vmem>>, vector<1x32xf32>
    %244 = vector.broadcast %243 : vector<1x32xf32> to vector<16x32xf32>
    %245 = arith.addf %242, %244 : vector<16x32xf32>
    %c0_194 = arith.constant 0 : index
    %c0_195 = arith.constant 0 : index
    %246 = vector.load %arg34[%c0_194, %c0_195] : memref<32x80xf32, #tpu.memory_space<vmem>>, vector<32x80xf32>
    %cst_196 = arith.constant dense<0.000000e+00> : vector<16x80xf32>
    %247 = tpu.matmul %245, %246, %cst_196 {dimension_numbers = #tpu.dot_dimension_numbers<[1], [0], [0], [1], [0, 0, 1, 1], [], []>} : vector<16x32xf32>, vector<32x80xf32>, vector<16x80xf32> -> vector<16x80xf32>
    %c0_197 = arith.constant 0 : index
    %c0_198 = arith.constant 0 : index
    %248 = vector.load %arg35[%c0_197, %c0_198] : memref<1x80xf32, #tpu.memory_space<vmem>>, vector<1x80xf32>
    %249 = vector.broadcast %248 : vector<1x80xf32> to vector<16x80xf32>
    %250 = arith.addf %247, %249 : vector<16x80xf32>
    %c0_199 = arith.constant 0 : index
    %c0_200 = arith.constant 0 : index
    %c0_201 = arith.constant 0 : index
    %251 = vector.load %arg36[%c0_199, %c0_200, %c0_201] : memref<1x16x80xf32, #tpu.memory_space<vmem>>, vector<1x16x80xf32>
    %252 = vector.shape_cast %251 : vector<1x16x80xf32> to vector<16x80xf32>
    %253 = vector.shape_cast %250 : vector<16x80xf32> to vector<1x16x80xf32>
    tpu.vector_store %arg36[%c0_199, %c0_200, %c0_201], %253 {strides = array<i32>} : memref<1x16x80xf32, #tpu.memory_space<vmem>>, vector<1x16x80xf32>,
    return
  }
  func.func @transform_0(%arg0: i32) -> (i32, i32, i32) {
    %c0_i32 = arith.constant 0 : i32
    %c0_i32_0 = arith.constant 0 : i32
    %c0_i32_1 = arith.constant 0 : i32
    return %arg0, %c0_i32, %c0_i32_0 : i32, i32, i32
  }
  func.func @transform_1(%arg0: i32) -> (i32, i32, i32) {
    %c0_i32 = arith.constant 0 : i32
    %c0_i32_0 = arith.constant 0 : i32
    %c0_i32_1 = arith.constant 0 : i32
    return %arg0, %c0_i32, %c0_i32_0 : i32, i32, i32
  }
  func.func @transform_2(%arg0: i32) -> (i32, i32, i32) {
    %c0_i32 = arith.constant 0 : i32
    %c0_i32_0 = arith.constant 0 : i32
    %c0_i32_1 = arith.constant 0 : i32
    return %arg0, %c0_i32, %c0_i32_0 : i32, i32, i32
  }
  func.func @transform_3(%arg0: i32) -> (i32, i32) {
    %c0_i32 = arith.constant 0 : i32
    %c0_i32_0 = arith.constant 0 : i32
    %c0_i32_1 = arith.constant 0 : i32
    return %c0_i32, %c0_i32_0 : i32, i32
  }
  func.func @transform_4(%arg0: i32) -> (i32, i32) {
    %c0_i32 = arith.constant 0 : i32
    %c0_i32_0 = arith.constant 0 : i32
    %c0_i32_1 = arith.constant 0 : i32
    return %c0_i32, %c0_i32_0 : i32, i32
  }
  func.func @transform_5(%arg0: i32) -> (i32, i32) {
    %c0_i32 = arith.constant 0 : i32
    %c0_i32_0 = arith.constant 0 : i32
    %c0_i32_1 = arith.constant 0 : i32
    return %c0_i32, %c0_i32_0 : i32, i32
  }
  func.func @transform_6(%arg0: i32) -> (i32, i32) {
    %c0_i32 = arith.constant 0 : i32
    %c0_i32_0 = arith.constant 0 : i32
    %c0_i32_1 = arith.constant 0 : i32
    return %c0_i32, %c0_i32_0 : i32, i32
  }
  func.func @transform_7(%arg0: i32) -> (i32, i32) {
    %c0_i32 = arith.constant 0 : i32
    %c0_i32_0 = arith.constant 0 : i32
    %c0_i32_1 = arith.constant 0 : i32
    return %c0_i32, %c0_i32_0 : i32, i32
  }
  func.func @transform_8(%arg0: i32) -> (i32, i32) {
    %c0_i32 = arith.constant 0 : i32
    %c0_i32_0 = arith.constant 0 : i32
    %c0_i32_1 = arith.constant 0 : i32
    return %c0_i32, %c0_i32_0 : i32, i32
  }
  func.func @transform_9(%arg0: i32) -> (i32, i32) {
    %c0_i32 = arith.constant 0 : i32
    %c0_i32_0 = arith.constant 0 : i32
    %c0_i32_1 = arith.constant 0 : i32
    return %c0_i32, %c0_i32_0 : i32, i32
  }
  func.func @transform_10(%arg0: i32) -> (i32, i32) {
    %c0_i32 = arith.constant 0 : i32
    %c0_i32_0 = arith.constant 0 : i32
    %c0_i32_1 = arith.constant 0 : i32
    return %c0_i32, %c0_i32_0 : i32, i32
  }
  func.func @transform_11(%arg0: i32) -> (i32, i32) {
    %c0_i32 = arith.constant 0 : i32
    %c0_i32_0 = arith.constant 0 : i32
    %c0_i32_1 = arith.constant 0 : i32
    return %c0_i32, %c0_i32_0 : i32, i32
  }
  func.func @transform_12(%arg0: i32) -> (i32, i32) {
    %c0_i32 = arith.constant 0 : i32
    %c0_i32_0 = arith.constant 0 : i32
    %c0_i32_1 = arith.constant 0 : i32
    return %c0_i32, %c0_i32_0 : i32, i32
  }
  func.func @transform_13(%arg0: i32) -> (i32, i32) {
    %c0_i32 = arith.constant 0 : i32
    %c0_i32_0 = arith.constant 0 : i32
    %c0_i32_1 = arith.constant 0 : i32
    return %c0_i32, %c0_i32_0 : i32, i32
  }
  func.func @transform_14(%arg0: i32) -> (i32, i32) {
    %c0_i32 = arith.constant 0 : i32
    %c0_i32_0 = arith.constant 0 : i32
    %c0_i32_1 = arith.constant 0 : i32
    return %c0_i32, %c0_i32_0 : i32, i32
  }
  func.func @transform_15(%arg0: i32) -> (i32, i32) {
    %c0_i32 = arith.constant 0 : i32
    %c0_i32_0 = arith.constant 0 : i32
    %c0_i32_1 = arith.constant 0 : i32
    return %c0_i32, %c0_i32_0 : i32, i32
  }
  func.func @transform_16(%arg0: i32) -> (i32, i32) {
    %c0_i32 = arith.constant 0 : i32
    %c0_i32_0 = arith.constant 0 : i32
    %c0_i32_1 = arith.constant 0 : i32
    return %c0_i32, %c0_i32_0 : i32, i32
  }
  func.func @transform_17(%arg0: i32) -> (i32, i32) {
    %c0_i32 = arith.constant 0 : i32
    %c0_i32_0 = arith.constant 0 : i32
    %c0_i32_1 = arith.constant 0 : i32
    return %c0_i32, %c0_i32_0 : i32, i32
  }
  func.func @transform_18(%arg0: i32) -> (i32, i32) {
    %c0_i32 = arith.constant 0 : i32
    %c0_i32_0 = arith.constant 0 : i32
    %c0_i32_1 = arith.constant 0 : i32
    return %c0_i32, %c0_i32_0 : i32, i32
  }
  func.func @transform_19(%arg0: i32) -> (i32, i32) {
    %c0_i32 = arith.constant 0 : i32
    %c0_i32_0 = arith.constant 0 : i32
    %c0_i32_1 = arith.constant 0 : i32
    return %c0_i32, %c0_i32_0 : i32, i32
  }
  func.func @transform_20(%arg0: i32) -> (i32, i32) {
    %c0_i32 = arith.constant 0 : i32
    %c0_i32_0 = arith.constant 0 : i32
    %c0_i32_1 = arith.constant 0 : i32
    return %c0_i32, %c0_i32_0 : i32, i32
  }
  func.func @transform_21(%arg0: i32) -> (i32, i32, i32) {
    %c0_i32 = arith.constant 0 : i32
    %c0_i32_0 = arith.constant 0 : i32
    %c0_i32_1 = arith.constant 0 : i32
    %c0_i32_2 = arith.constant 0 : i32
    return %c0_i32, %c0_i32_0, %c0_i32_1 : i32, i32, i32
  }
  func.func @transform_22(%arg0: i32) -> (i32, i32) {
    %c0_i32 = arith.constant 0 : i32
    %c0_i32_0 = arith.constant 0 : i32
    %c0_i32_1 = arith.constant 0 : i32
    return %c0_i32, %c0_i32_0 : i32, i32
  }
  func.func @transform_23(%arg0: i32) -> (i32, i32) {
    %c0_i32 = arith.constant 0 : i32
    %c0_i32_0 = arith.constant 0 : i32
    %c0_i32_1 = arith.constant 0 : i32
    return %c0_i32, %c0_i32_0 : i32, i32
  }
  func.func @transform_24(%arg0: i32) -> (i32, i32) {
    %c0_i32 = arith.constant 0 : i32
    %c0_i32_0 = arith.constant 0 : i32
    %c0_i32_1 = arith.constant 0 : i32
    return %c0_i32, %c0_i32_0 : i32, i32
  }
  func.func @transform_25(%arg0: i32) -> (i32, i32, i32) {
    %c0_i32 = arith.constant 0 : i32
    %c0_i32_0 = arith.constant 0 : i32
    %c0_i32_1 = arith.constant 0 : i32
    %c0_i32_2 = arith.constant 0 : i32
    return %c0_i32, %c0_i32_0, %c0_i32_1 : i32, i32, i32
  }
  func.func @transform_26(%arg0: i32) -> (i32, i32) {
    %c0_i32 = arith.constant 0 : i32
    %c0_i32_0 = arith.constant 0 : i32
    %c0_i32_1 = arith.constant 0 : i32
    return %c0_i32, %c0_i32_0 : i32, i32
  }
  func.func @transform_27(%arg0: i32) -> (i32, i32) {
    %c0_i32 = arith.constant 0 : i32
    %c0_i32_0 = arith.constant 0 : i32
    %c0_i32_1 = arith.constant 0 : i32
    return %c0_i32, %c0_i32_0 : i32, i32
  }
  func.func @transform_28(%arg0: i32) -> (i32, i32) {
    %c0_i32 = arith.constant 0 : i32
    %c0_i32_0 = arith.constant 0 : i32
    %c0_i32_1 = arith.constant 0 : i32
    return %c0_i32, %c0_i32_0 : i32, i32
  }
  func.func @transform_29(%arg0: i32) -> (i32, i32, i32) {
    %c0_i32 = arith.constant 0 : i32
    %c0_i32_0 = arith.constant 0 : i32
    %c0_i32_1 = arith.constant 0 : i32
    %c0_i32_2 = arith.constant 0 : i32
    return %c0_i32, %c0_i32_0, %c0_i32_1 : i32, i32, i32
  }
  func.func @transform_30(%arg0: i32) -> (i32, i32) {
    %c0_i32 = arith.constant 0 : i32
    %c0_i32_0 = arith.constant 0 : i32
    %c0_i32_1 = arith.constant 0 : i32
    return %c0_i32, %c0_i32_0 : i32, i32
  }
  func.func @transform_31(%arg0: i32) -> (i32, i32) {
    %c0_i32 = arith.constant 0 : i32
    %c0_i32_0 = arith.constant 0 : i32
    %c0_i32_1 = arith.constant 0 : i32
    return %c0_i32, %c0_i32_0 : i32, i32
  }
  func.func @transform_32(%arg0: i32) -> (i32, i32) {
    %c0_i32 = arith.constant 0 : i32
    %c0_i32_0 = arith.constant 0 : i32
    %c0_i32_1 = arith.constant 0 : i32
    return %c0_i32, %c0_i32_0 : i32, i32
  }
  func.func @transform_33(%arg0: i32) -> (i32, i32) {
    %c0_i32 = arith.constant 0 : i32
    %c0_i32_0 = arith.constant 0 : i32
    %c0_i32_1 = arith.constant 0 : i32
    return %c0_i32, %c0_i32_0 : i32, i32
  }
  func.func @transform_34(%arg0: i32) -> (i32, i32) {
    %c0_i32 = arith.constant 0 : i32
    %c0_i32_0 = arith.constant 0 : i32
    %c0_i32_1 = arith.constant 0 : i32
    return %c0_i32, %c0_i32_0 : i32, i32
  }
  func.func @transform_35(%arg0: i32) -> (i32, i32, i32) {
    %c0_i32 = arith.constant 0 : i32
    %c0_i32_0 = arith.constant 0 : i32
    %c0_i32_1 = arith.constant 0 : i32
    return %arg0, %c0_i32, %c0_i32_0 : i32, i32, i32
  }
}

</mosaic_0001>

<bundles_post_ra>
// kernel: tpu_custom_call.1
= control target key start
LH: loop header
LB: loop body
LE: loop exit
PB: predicated region body
PF: predicated region fallthrough
CT: control target
= control target key end

     0   :  { %s3763_s6 = smov 1   ;;  %s3764_s10 = smov 2   ;;  %s4539_s0 = inlined_call_operand.smem [shape: u32[36], index: -1, kind: input, shape index: {}] }
   0x1   :  { %s3825_s5 = sld [smem:[%s4539_s0]]   ;;  %s3765_s14 = smov 3  }
   0x2   :  { %s3830_s9 = sld [smem:[%s4539_s0 + %s3763_s6]]   ;;  %s3766_s18 = smov 4  }
   0x3   :  { %s3835_s13 = sld [smem:[%s4539_s0 + %s3764_s10]]   ;;  %s3767_s22 = smov 5  }
   0x4   :  { %s3840_s17 = sld [smem:[%s4539_s0 + %s3765_s14]]   ;;  %s3768_s26 = smov 6  }
   0x5   :  { %s3845_s21 = sld [smem:[%s4539_s0 + %s3766_s18]]   ;;  %s3769_s30 = smov 7  }
   0x6   :  { %s3850_s25 = sld [smem:[%s4539_s0 + %s3767_s22]]   ;;  %s3770_s4 = smov 8  }
   0x7   :  { %4554 = sst [smem:[#allocation36_spill]] %s3825_s5  ;;  %s3771_s10 = smov 9  }
   0x8   :  { %4555 = sst [smem:[#allocation37_spill]] %s3830_s9  ;;  %s3772_s15 = smov 10  }
   0x9   :  { %s3855_s29 = sld [smem:[%s4539_s0 + %s3768_s26]]   ;;  %s3773_s20 = smov 11  }
   0xa   :  { %4556 = sst [smem:[#allocation38_spill]] %s3840_s17  ;;  %s3774_s26 = smov 12  }
   0xb   :  { %s3860_s3 = sld [smem:[%s4539_s0 + %s3769_s30]]   ;;  %s3775_s1 = smov 13  }
   0xc   :  { %s3865_s8 = sld [smem:[%s4539_s0 + %s3770_s4]]   ;;  %s3776_s7 = smov 14  }
   0xd   :  { %s3870_s14 = sld [smem:[%s4539_s0 + %s3771_s10]]   ;;  %s3778_s22 = smov 16  }
   0xe   :  { %s3875_s19 = sld [smem:[%s4539_s0 + %s3772_s15]]   ;;  %s3777_s15 = smov 15  }
   0xf   :  { %s3880_s24 = sld [smem:[%s4539_s0 + %s3773_s20]]   ;;  %s3779_s28 = smov 17  }
  0x10   :  { %s3885_s30 = sld [smem:[%s4539_s0 + %s3774_s26]]  }
  0x11   :  { %4557 = sst [smem:[#allocation39_spill]] %s3860_s3 }
  0x12   :  { %4558 = sst [smem:[#allocation40_spill]] %s3865_s8 }
  0x13   :  { %s3890_s6 = sld [smem:[%s4539_s0 + %s3775_s1]]  }
  0x14   :  { %s3895_s12 = sld [smem:[%s4539_s0 + %s3776_s7]]   ;;  %s3780_s7 = smov 18  }
  0x15   :  { %4559 = sst [smem:[#allocation41_spill]] %s3880_s24 }
  0x16   :  { %4560 = sst [smem:[#allocation42_spill]] %s3885_s30 }
  0x17   :  { %s3900_s20 = sld [smem:[%s4539_s0 + %s3777_s15]]   ;;  %s3781_s15 = smov 19  }
  0x18   :  { %s3905_s27 = sld [smem:[%s4539_s0 + %s3778_s22]]   ;;  %s3782_s22 = smov 20  }
  0x19   :  { %4561 = sst [smem:[#allocation43_spill]] %s3890_s6 }
  0x1a   :  { %4562 = sst [smem:[#allocation44_spill]] %s3895_s12 }
  0x1b   :  { %s3910_s4 = sld [smem:[%s4539_s0 + %s3779_s28]]   ;;  %s3783_s28 = smov 21  }
  0x1c   :  { %s3915_s30 = sld [smem:[%s4539_s0 + %s3780_s7]]   ;;  %s3784_s7 = smov 22  }
  0x1d   :  { %s3920_s12 = sld [smem:[%s4539_s0 + %s3781_s15]]   ;;  %s3785_s15 = smov 23  }
  0x1e   :  { %4563 = sst [smem:[#allocation45_spill]] %s3905_s27 }
  0x1f   :  { %s3925_s27 = sld [smem:[%s4539_s0 + %s3782_s22]]   ;;  %s3786_s22 = smov 24  }
  0x20   :  { %s3930_s24 = sld [smem:[%s4539_s0 + %s3783_s28]]   ;;  %s3787_s28 = smov 25  }
  0x21   :  { %4564 = sst [smem:[#allocation46_spill]] %s3910_s4 }
  0x22   :  { %4565 = sst [smem:[#allocation47_spill]] %s3915_s30 }
  0x23   :  { %4566 = sst [smem:[#allocation48_spill]] %s3920_s12 }
  0x24   :  { %s3935_s30 = sld [smem:[%s4539_s0 + %s3784_s7]]   ;;  %s3788_s7 = smov 26  }
  0x25   :  { %4567 = sst [smem:[#allocation49_spill]] %s3925_s27 }
  0x26   :  { %s3940_s12 = sld [smem:[%s4539_s0 + %s3785_s15]]   ;;  %s3789_s15 = smov 27  }
  0x27   :  { %s3945_s27 = sld [smem:[%s4539_s0 + %s3786_s22]]   ;;  %s3790_s22 = smov 28  }
  0x28   :  { %s3950_s6 = sld [smem:[%s4539_s0 + %s3787_s28]]   ;;  %s3791_s28 = smov 29  }
  0x2a   :  { %4568 = sst [smem:[#allocation50_spill]] %s3935_s30 }
  0x2b   :  { %s3955_s30 = sld [smem:[%s4539_s0 + %s3788_s7]]   ;;  %s3792_s7 = smov 30  }
  0x2c   :  { %4569 = sst [smem:[#allocation51_spill]] %s3940_s12 }
  0x2d   :  { %4570 = sst [smem:[#allocation52_spill]] %s3945_s27 }
  0x2e   :  { %4571 = sst [smem:[#allocation53_spill]] %s3950_s6 }
  0x2f   :  { %s3960_s12 = sld [smem:[%s4539_s0 + %s3789_s15]]   ;;  %s3793_s15 = smov 31  }
  0x30   :  { %s3965_s27 = sld [smem:[%s4539_s0 + %s3790_s22]]   ;;  %s3794_s22 = smov 32  }
  0x31   :  { %4572 = sst [smem:[#allocation54_spill]] %s3955_s30 }
  0x32   :  { %s3970_s6 = sld [smem:[%s4539_s0 + %s3791_s28]]   ;;  %s3795_s28 = smov 33  }
  0x33   :  { %s3975_s30 = sld [smem:[%s4539_s0 + %s3792_s7]]   ;;  %s3796_s7 = smov 34  }
  0x34   :  { %s3990_s9 = sld [smem:[%s4539_s0 + %s3795_s28]]  }
  0x35   :  { %4573 = sst [smem:[#allocation55_spill]] %s3960_s12 }
  0x36   :  { %4574 = sst [smem:[#allocation56_spill]] %s3965_s27 }
  0x37   :  { %s3980_s12 = sld [smem:[%s4539_s0 + %s3793_s15]]   ;;  %s3797_s15 = smov 35  }
  0x38   :  { %4575 = sst [smem:[#allocation57_spill]] %s3970_s6 }
  0x39   :  { %4576 = sst [smem:[#allocation58_spill]] %s3975_s30 }
  0x3a   :  { %s3985_s27 = sld [smem:[%s4539_s0 + %s3794_s22]]  }
  0x3b   :  { %4579 = sst [smem:[#allocation61_spill]] %s3990_s9 }
  0x3c   :  { %s3995_s30 = sld [smem:[%s4539_s0 + %s3796_s7]]  }
  0x3d   :  { %4577 = sst [smem:[#allocation59_spill]] %s3980_s12 }
  0x3e   :  { %s4000_s12 = sld [smem:[%s4539_s0 + %s3797_s15]]  }
  0x40   :  { %4578 = sst [smem:[#allocation60_spill]] %s3985_s27 }
  0x42   :  { %4580 = sst [smem:[#allocation62_spill]] %s3995_s30 }
  0x44   :  { %4581 = sst [smem:[#allocation63_spill]] %s4000_s12 }
  0x45   :  { %76 = vsyncpa [#allocation4], 0 }
  0x46   :  { %78 = vsyncpa [#allocation4 + $0x1], 0 }
  0x47   :  { %79 = vsyncpa [#allocation7], 0 }
  0x48   :  { %80 = vsyncpa [#allocation10], 0 }
  0x49   :  { %81 = vsyncpa [#allocation13], 0 }
  0x4a   :  { %82 = vsyncpa [#allocation16], 0 }
  0x4b   :  { %83 = vsyncpa [#allocation19], 0 }
  0x4c   :  { %84 = vsyncpa [#allocation22], 0 }
  0x4d   :  { %85 = vsyncpa [#allocation25], 0 }
  0x4e   :  { %86 = vsyncpa [#allocation5], 0 }
  0x4f   :  { %88 = vsyncpa [#allocation5 + $0x1], 0  ;;  %s4002_s22 = smov 0   ;;  %s4004_s23 = smov 0  }
  0x50   :  { %s4006_s26 = smov 0   ;;  %s4008_s28 = smov 0  }
  0x51 LB: > { %s4582_s9 = sld [smem:[#allocation61_spill]]  ;;  %s4026_s1 = sadd.s32 4294967295, %s3761_s28   ;;  %s3753_s23 = sphi %s4004_s23, %s4636_s23   ;;  %s3749_s22 = sphi %s4002_s22, %s4635_s22   ;;  %s3761_s28 = sphi %s4008_s28, %s4638_s28   ;;  %s3757_s26 = sphi %s4006_s26, %s4637_s26  }
  0x52   : > { %s4583_s8 = sld [smem:[#allocation40_spill]]  ;;  %p2880_p0 = scmp.ge.s32.totalorder %s3761_s28, 1 }
  0x53   : > { %s4584_s6 = sld [smem:[#allocation57_spill]]  ;;  %p4549_p1 = scmp.eq.s32.totalorder %s4026_s1, 0 }
  0x54   : > { %s4585_s4 = sld [smem:[#allocation46_spill]]  ;;  %p875_p2 = scmp.lt.s32.totalorder %s3761_s28, 3 }
  0x55   : > { %s4586_s3 = sld [smem:[#allocation39_spill]]  ;;  %s3798_s7 = smov [#allocation6]  }
  0x56   : > { %s4587_s17 = sld [smem:[#allocation38_spill]]  ;;  %p4031_p3 = pnand %p2880_p0, %p875_p2 }
  0x57   : > { %s4035_s10 = sshll.u32 %s3798_s7, 4  ;;  %s912_s11 = sshll.u32 %s3850_s25, 4  ;;  %s889_s10 = int_to_ptr.vmem [resolvable:$true] %s4035_s10  ;;  %s4048_s11 = int_to_ptr.hbm [resolvable:$true] %s912_s11 }
  0x58   : > { %s4588_s2 = scalar_select %p4031_p3, 1, 0 }
  0x59   : > { %p3040_p4 = pneg %p4031_p3  ;;  %s3799_s18 = smov [#allocation9]  }
  0x5a   : > { %4589 = sst [smem:[#allocation64_spill]] %s4588_s2  ;;  %s4051_s7 = sshll.u32 %s3799_s18, 4  ;;  %s915_s7 = int_to_ptr.vmem [resolvable:$true] %s4051_s7 }
  0x5b   : > { %p4044_p6 = pnand %p3040_p4, %p4549_p1  ;;  %s938_s16 = sshll.u32 %s4586_s3, 4  ;;  %s4071_s16 = int_to_ptr.hbm [resolvable:$true] %s938_s16 }
  0x5c   : > { %s886_s0 = sshll.u32 %s4587_s17, 4  ;;  %s3254_s5 = scalar_lea.hbm %s4587_s17, 16  ;;  %s4023_s0 = int_to_ptr.hbm [resolvable:$true] %s886_s0 }
  0x5d   : > { %s3247_s12 = sshra.s32 %s4023_s0, 4  ;;  %p4056_p8 = pneg %p4044_p6  ;;  %s3248_s12 = int_to_ptr.hbm [resolvable:$true] %s3247_s12 }
  0x5e   : > { %s3249_s30 = scalar_lea.hbm %s3248_s12, 16  ;;  %p3255_p11 = scmp.lt.s32.totalorder %s3248_s12, %s4587_s17 }
  0x5f   : > { %p3250_p7 = scmp.ne.s32.totalorder %s3248_s12, %s3249_s30  ;;  %p3256_p12 = scmp.lt.s32.totalorder %s3254_s5, %s3249_s30 }
  0x61   : > { %p3252_p9 = pnand %p4056_p8, %p3250_p7  ;;  %p3257_p13 = por %p3256_p12, %p3255_p11 }
  0x63   : > { %p3253_p10 = pneg %p3252_p9 }
  0x65   : > { %p3258_p0 = pnand %p3257_p13, %p3253_p10 }
  0x67   : > { %3261 = shalt.err (!%p3258_p0)
}
  0x68   : > { %s3800_s18 = smov 128   ;;  %s3801_s2 = smov 8  }
  0x69   : > { %3043 = dma.hbm_to_vmem [thread:$0]  (!%p4044_p6), %s4023_s0, 256, %s889_s10, [#allocation7], %s3800_s18, %s3800_s18, %s3801_s2  }
  0x6a   : > { %s3277_s5 = sshra.s32 %s4048_s11, 4  ;;  %s3284_s12 = scalar_lea.hbm %s3850_s25, 16  ;;  %s3278_s5 = int_to_ptr.hbm [resolvable:$true] %s3277_s5 }
  0x6b   : > { %s3279_s30 = scalar_lea.hbm %s3278_s5, 16  ;;  %p3285_p9 = scmp.lt.s32.totalorder %s3278_s5, %s3850_s25 }
  0x6c   : > { %p3280_p2 = scmp.ne.s32.totalorder %s3278_s5, %s3279_s30  ;;  %p3286_p10 = scmp.lt.s32.totalorder %s3284_s12, %s3279_s30 }
  0x6e   : > { %p3282_p4 = pnand %p3280_p2, %p4056_p8  ;;  %p3287_p11 = por %p3286_p10, %p3285_p9 }
  0x70   : > { %p3283_p7 = pneg %p3282_p4 }
  0x72   : > { %p3288_p12 = pnand %p3287_p11, %p3283_p7 }
  0x74   : > { %3291 = shalt.err (!%p3288_p12)
}
  0x75   : > { %3049 = dma.hbm_to_vmem [thread:$0]  (!%p4044_p6), %s4048_s11, 256, %s915_s7, [#allocation10], %s3800_s18, %s3800_s18, %s3801_s2  }
  0x76   : > { %s965_s0 = sshll.u32 %s3870_s14, 4  ;;  %s3802_s10 = smov [#allocation12]   ;;  %s4085_s0 = int_to_ptr.hbm [resolvable:$true] %s965_s0 }
  0x77   : > { %s940_s17 = sshll.u32 %s3802_s10, 4  ;;  %s3307_s5 = sshra.s32 %s4071_s16, 4  ;;  %s941_s17 = int_to_ptr.vmem [resolvable:$true] %s940_s17  ;;  %s3308_s5 = int_to_ptr.hbm [resolvable:$true] %s3307_s5 }
  0x78   : > { %s3309_s30 = scalar_lea.hbm %s3308_s5, 24  ;;  %s3314_s12 = scalar_lea.hbm %s4586_s3, 24 }
  0x79   : > { %p3310_p13 = scmp.ne.s32.totalorder %s3308_s5, %s3309_s30  ;;  %p3315_p4 = scmp.lt.s32.totalorder %s3308_s5, %s4586_s3 }
  0x7a   : > { %p3316_p7 = scmp.lt.s32.totalorder %s3314_s12, %s3309_s30 }
  0x7b   : > { %p3312_p0 = pnand %p3310_p13, %p4056_p8 }
  0x7c   : > { %p3317_p9 = por %p3316_p7, %p3315_p4 }
  0x7d   : > { %p3313_p2 = pneg %p3312_p0 }
  0x7f   : > { %p3318_p10 = pnand %p3317_p9, %p3313_p2 }
  0x81   : > { %3321 = shalt.err (!%p3318_p10)
}
  0x82   : > { %3055 = dma.hbm_to_vmem [thread:$0]  (!%p4044_p6), %s4071_s16, 384, %s941_s17, [#allocation13], %s3800_s18, %s3800_s18, %s3801_s2  }
  0x83   : > { %s3803_s11 = smov [#allocation15]   ;;  %s1000_s10 = sshll.u32 %s3900_s20, 4  ;;  %s4099_s10 = int_to_ptr.hbm [resolvable:$true] %s1000_s10 }
  0x84   : > { %s967_s7 = sshll.u32 %s3803_s11, 4  ;;  %s3337_s5 = sshra.s32 %s4085_s0, 4  ;;  %s968_s7 = int_to_ptr.vmem [resolvable:$true] %s967_s7  ;;  %s3338_s5 = int_to_ptr.hbm [resolvable:$true] %s3337_s5 }
  0x85   : > { %s3339_s30 = scalar_lea.hbm %s3338_s5, 1  ;;  %s3344_s12 = scalar_lea.hbm %s3870_s14, 1 }
  0x86   : > { %p3340_p11 = scmp.ne.s32.totalorder %s3338_s5, %s3339_s30  ;;  %p3345_p0 = scmp.lt.s32.totalorder %s3338_s5, %s3870_s14 }
  0x87   : > { %p3346_p2 = scmp.lt.s32.totalorder %s3344_s12, %s3339_s30 }
  0x88   : > { %p3342_p12 = pnand %p3340_p11, %p4056_p8 }
  0x89   : > { %p3347_p4 = por %p3346_p2, %p3345_p0 }
  0x8a   : > { %p3343_p13 = pneg %p3342_p12 }
  0x8c   : > { %p3348_p7 = pnand %p3347_p4, %p3343_p13 }
  0x8e   : > { %3351 = shalt.err (!%p3348_p7)
}
  0x8f   : > { %3061 = dma.hbm_to_vmem [thread:$0]  (!%p4044_p6), %s4085_s0, 16, %s968_s7, [#allocation16]  }
  0x90   : > { %s1040_s17 = sshll.u32 %s3930_s24, 4  ;;  %s3804_s16 = smov [#allocation18]   ;;  %s4110_s17 = int_to_ptr.hbm [resolvable:$true] %s1040_s17 }
  0x91   : > { %s1002_s11 = sshll.u32 %s3804_s16, 4  ;;  %s3367_s5 = sshra.s32 %s4099_s10, 4  ;;  %s1003_s11 = int_to_ptr.vmem [resolvable:$true] %s1002_s11  ;;  %s3368_s5 = int_to_ptr.hbm [resolvable:$true] %s3367_s5 }
  0x92   : > { %s3369_s30 = scalar_lea.hbm %s3368_s5, 32  ;;  %s3374_s12 = scalar_lea.hbm %s3900_s20, 32 }
  0x93   : > { %p3370_p9 = scmp.ne.s32.totalorder %s3368_s5, %s3369_s30  ;;  %p3375_p12 = scmp.lt.s32.totalorder %s3368_s5, %s3900_s20 }
  0x94   : > { %p3376_p13 = scmp.lt.s32.totalorder %s3374_s12, %s3369_s30 }
  0x95   : > { %p3372_p10 = pnand %p3370_p9, %p4056_p8 }
  0x96   : > { %p3377_p0 = por %p3376_p13, %p3375_p12 }
  0x97   : > { %p3373_p11 = pneg %p3372_p10 }
  0x99   : > { %p3378_p2 = pnand %p3377_p0, %p3373_p11 }
  0x9b   : > { %3381 = shalt.err (!%p3378_p2)
}
  0x9c   : > { %3067 = dma.hbm_to_vmem [thread:$0]  (!%p4044_p6), %s4099_s10, 512, %s1003_s11, [#allocation19], %s3800_s18, %s3800_s18, %s3801_s2  }
  0x9d   : > { %s3805_s0 = smov [#allocation21]   ;;  %s901_s16 = sshll.u32 %s3845_s21, 4  ;;  %s4124_s16 = int_to_ptr.hbm [resolvable:$true] %s901_s16 }
  0x9e   : > { %s1042_s7 = sshll.u32 %s3805_s0, 4  ;;  %s3397_s5 = sshra.s32 %s4110_s17, 4  ;;  %s1043_s7 = int_to_ptr.vmem [resolvable:$true] %s1042_s7  ;;  %s3398_s5 = int_to_ptr.hbm [resolvable:$true] %s3397_s5 }
  0x9f   : > { %s3399_s30 = scalar_lea.hbm %s3398_s5, 288  ;;  %s3404_s12 = scalar_lea.hbm %s3930_s24, 288 }
  0xa0   : > { %p3400_p4 = scmp.ne.s32.totalorder %s3398_s5, %s3399_s30  ;;  %p3405_p10 = scmp.lt.s32.totalorder %s3398_s5, %s3930_s24 }
  0xa1   : > { %p3406_p11 = scmp.lt.s32.totalorder %s3404_s12, %s3399_s30 }
  0xa2   : > { %p3402_p7 = pnand %p3400_p4, %p4056_p8 }
  0xa3   : > { %p3407_p12 = por %p3406_p11, %p3405_p10 }
  0xa4   : > { %p3403_p9 = pneg %p3402_p7 }
  0xa6   : > { %p3408_p13 = pnand %p3407_p12, %p3403_p9 }
  0xa8   : > { %3411 = shalt.err (!%p3408_p13)
}
  0xa9   : > { %3073 = dma.hbm_to_vmem [thread:$0]  (!%p4044_p6), %s4110_s17, 4608, %s1043_s7, [#allocation22], %s3800_s18, %s3800_s18, %s3801_s2  }
  0xaa   : > { %s927_s10 = sshll.u32 %s3855_s29, 4  ;;  %s3806_s11 = smov [#allocation8]   ;;  %s4138_s10 = int_to_ptr.hbm [resolvable:$true] %s927_s10 }
  0xab   : > { %s903_s0 = sshll.u32 %s3806_s11, 4  ;;  %s3427_s5 = sshra.s32 %s4124_s16, 4  ;;  %s904_s0 = int_to_ptr.vmem [resolvable:$true] %s903_s0  ;;  %s3428_s5 = int_to_ptr.hbm [resolvable:$true] %s3427_s5 }
  0xac   : > { %s3429_s30 = scalar_lea.hbm %s3428_s5, 1  ;;  %s3434_s12 = scalar_lea.hbm %s3845_s21, 1 }
  0xad   : > { %p3430_p0 = scmp.ne.s32.totalorder %s3428_s5, %s3429_s30  ;;  %p3435_p7 = scmp.lt.s32.totalorder %s3428_s5, %s3845_s21 }
  0xae   : > { %p3436_p9 = scmp.lt.s32.totalorder %s3434_s12, %s3429_s30 }
  0xaf   : > { %p3432_p2 = pnand %p3430_p0, %p4056_p8 }
  0xb0   : > { %p3437_p10 = por %p3436_p9, %p3435_p7 }
  0xb1   : > { %p3433_p4 = pneg %p3432_p2 }
  0xb3   : > { %p3438_p11 = pnand %p3437_p10, %p3433_p4 }
  0xb5   : > { %3441 = shalt.err (!%p3438_p11)
}
  0xb6   : > { %3046 = dma.hbm_to_vmem [thread:$0]  (!%p4044_p6), %s4124_s16, 16, %s904_s0, [#allocation7]  }
  0xb7   : > { %s3807_s17 = smov [#allocation11]   ;;  %s953_s11 = sshll.u32 %s4583_s8, 4  ;;  %s4149_s11 = int_to_ptr.hbm [resolvable:$true] %s953_s11 }
  0xb8   : > { %s929_s7 = sshll.u32 %s3807_s17, 4  ;;  %s3457_s5 = sshra.s32 %s4138_s10, 4  ;;  %s930_s7 = int_to_ptr.vmem [resolvable:$true] %s929_s7  ;;  %s3458_s5 = int_to_ptr.hbm [resolvable:$true] %s3457_s5 }
  0xb9   : > { %s3459_s30 = scalar_lea.hbm %s3458_s5, 1  ;;  %s3464_s12 = scalar_lea.hbm %s3855_s29, 1 }
  0xba   : > { %p3460_p12 = scmp.ne.s32.totalorder %s3458_s5, %s3459_s30  ;;  %p3465_p2 = scmp.lt.s32.totalorder %s3458_s5, %s3855_s29 }
  0xbb   : > { %p3466_p4 = scmp.lt.s32.totalorder %s3464_s12, %s3459_s30 }
  0xbc   : > { %p3462_p13 = pnand %p3460_p12, %p4056_p8 }
  0xbd   : > { %p3467_p7 = por %p3466_p4, %p3465_p2 }
  0xbe   : > { %p3463_p0 = pneg %p3462_p13 }
  0xc0   : > { %p3468_p9 = pnand %p3467_p7, %p3463_p0 }
  0xc2   : > { %3471 = shalt.err (!%p3468_p9)
}
  0xc3   : > { %3052 = dma.hbm_to_vmem [thread:$0]  (!%p4044_p6), %s4138_s10, 16, %s930_s7, [#allocation10]  }
  0xc4   : > { %s977_s16 = sshll.u32 %s3875_s19, 4  ;;  %s3808_s0 = smov [#allocation14]   ;;  %s4160_s16 = int_to_ptr.hbm [resolvable:$true] %s977_s16 }
  0xc5   : > { %s955_s17 = sshll.u32 %s3808_s0, 4  ;;  %s3487_s5 = sshra.s32 %s4149_s11, 4  ;;  %s956_s17 = int_to_ptr.vmem [resolvable:$true] %s955_s17  ;;  %s3488_s5 = int_to_ptr.hbm [resolvable:$true] %s3487_s5 }
  0xc6   : > { %s3489_s30 = scalar_lea.hbm %s3488_s5, 1  ;;  %s3494_s12 = scalar_lea.hbm %s4583_s8, 1 }
  0xc7   : > { %p3490_p10 = scmp.ne.s32.totalorder %s3488_s5, %s3489_s30  ;;  %p3495_p13 = scmp.lt.s32.totalorder %s3488_s5, %s4583_s8 }
  0xc8   : > { %p3496_p0 = scmp.lt.s32.totalorder %s3494_s12, %s3489_s30 }
  0xc9   : > { %p3492_p11 = pnand %p3490_p10, %p4056_p8 }
  0xca   : > { %p3497_p2 = por %p3496_p0, %p3495_p13 }
  0xcb   : > { %p3493_p12 = pneg %p3492_p11 }
  0xcd   : > { %p3498_p4 = pnand %p3497_p2, %p3493_p12 }
  0xcf   : > { %3501 = shalt.err (!%p3498_p4)
}
  0xd0   : > { %3058 = dma.hbm_to_vmem [thread:$0]  (!%p4044_p6), %s4149_s11, 16, %s956_s17, [#allocation13]  }
  0xd1   : > { %s3809_s10 = smov [#allocation17]   ;;  %s1017_s0 = sshll.u32 %s4585_s4, 4  ;;  %s4171_s0 = int_to_ptr.hbm [resolvable:$true] %s1017_s0 }
  0xd2   : > { %s979_s7 = sshll.u32 %s3809_s10, 4  ;;  %s3517_s5 = sshra.s32 %s4160_s16, 4  ;;  %s980_s7 = int_to_ptr.vmem [resolvable:$true] %s979_s7  ;;  %s3518_s5 = int_to_ptr.hbm [resolvable:$true] %s3517_s5 }
  0xd3   : > { %s3519_s30 = scalar_lea.hbm %s3518_s5, 1  ;;  %s3524_s12 = scalar_lea.hbm %s3875_s19, 1 }
  0xd4   : > { %p3520_p7 = scmp.ne.s32.totalorder %s3518_s5, %s3519_s30  ;;  %p3525_p11 = scmp.lt.s32.totalorder %s3518_s5, %s3875_s19 }
  0xd5   : > { %p3526_p12 = scmp.lt.s32.totalorder %s3524_s12, %s3519_s30 }
  0xd6   : > { %p3522_p9 = pnand %p3520_p7, %p4056_p8 }
  0xd7   : > { %p3527_p13 = por %p3526_p12, %p3525_p11 }
  0xd8   : > { %p3523_p10 = pneg %p3522_p9 }
  0xda   : > { %p3528_p0 = pnand %p3527_p13, %p3523_p10 }
  0xdc   : > { %3531 = shalt.err (!%p3528_p0)
}
  0xdd   : > { %3064 = dma.hbm_to_vmem [thread:$0]  (!%p4044_p6), %s4160_s16, 16, %s980_s7, [#allocation16]  }
  0xde   : > { %s1075_s11 = sshll.u32 %s4584_s6, 4  ;;  %s3810_s17 = smov [#allocation20]   ;;  %s4182_s11 = int_to_ptr.hbm [resolvable:$true] %s1075_s11 }
  0xdf   : > { %s1019_s10 = sshll.u32 %s3810_s17, 4  ;;  %s3547_s5 = sshra.s32 %s4171_s0, 4  ;;  %s1020_s10 = int_to_ptr.vmem [resolvable:$true] %s1019_s10  ;;  %s3548_s5 = int_to_ptr.hbm [resolvable:$true] %s3547_s5 }
  0xe0   : > { %s3549_s30 = scalar_lea.hbm %s3548_s5, 32  ;;  %s3554_s12 = scalar_lea.hbm %s4585_s4, 32 }
  0xe1   : > { %p3550_p2 = scmp.ne.s32.totalorder %s3548_s5, %s3549_s30  ;;  %p3555_p9 = scmp.lt.s32.totalorder %s3548_s5, %s4585_s4 }
  0xe2   : > { %p3556_p10 = scmp.lt.s32.totalorder %s3554_s12, %s3549_s30 }
  0xe3   : > { %p3552_p4 = pnand %p3550_p2, %p4056_p8 }
  0xe4   : > { %p3557_p11 = por %p3556_p10, %p3555_p9 }
  0xe5   : > { %p3553_p7 = pneg %p3552_p4 }
  0xe7   : > { %p3558_p12 = pnand %p3557_p11, %p3553_p7 }
  0xe9   : > { %3561 = shalt.err (!%p3558_p12)
}
  0xea   : > { %3070 = dma.hbm_to_vmem [thread:$0]  (!%p4044_p6), %s4171_s0, 512, %s1020_s10, [#allocation19], %s3800_s18, %s3800_s18, %s3801_s2  }
  0xeb   : > { %s3811_s16 = smov [#allocation23]   ;;  %s1098_s17 = sshll.u32 %s4582_s9, 4  ;;  %s4196_s17 = int_to_ptr.hbm [resolvable:$true] %s1098_s17 }
  0xec   : > { %s1077_s7 = sshll.u32 %s3811_s16, 4  ;;  %s3577_s5 = sshra.s32 %s4182_s11, 4  ;;  %s1078_s7 = int_to_ptr.vmem [resolvable:$true] %s1077_s7  ;;  %s3578_s5 = int_to_ptr.hbm [resolvable:$true] %s3577_s5 }
  0xed   : > { %s3579_s30 = scalar_lea.hbm %s3578_s5, 96  ;;  %s3584_s12 = scalar_lea.hbm %s4584_s6, 96 }
  0xee   : > { %p3580_p13 = scmp.ne.s32.totalorder %s3578_s5, %s3579_s30  ;;  %p3585_p4 = scmp.lt.s32.totalorder %s3578_s5, %s4584_s6 }
  0xef   : > { %p3586_p7 = scmp.lt.s32.totalorder %s3584_s12, %s3579_s30 }
  0xf0   : > { %p3582_p0 = pnand %p3580_p13, %p4056_p8 }
  0xf1   : > { %p3587_p9 = por %p3586_p7, %p3585_p4 }
  0xf2   : > { %p3583_p2 = pneg %p3582_p0 }
  0xf4   : > { %p3588_p10 = pnand %p3587_p9, %p3583_p2 }
  0xf6   : > { %3591 = shalt.err (!%p3588_p10)
}
  0xf7   : > { %3076 = dma.hbm_to_vmem [thread:$0]  (!%p4044_p6), %s4182_s11, 1536, %s1078_s7, [#allocation22], %s3800_s18, %s3800_s18, %s3801_s2  }
  0xf8   : > { %s3812_s0 = smov [#allocation24]   ;;  %s3607_s16 = sshra.s32 %s4196_s17, 4  ;;  %s3608_s16 = int_to_ptr.hbm [resolvable:$true] %s3607_s16 }
  0xf9   : > { %s1100_s10 = sshll.u32 %s3812_s0, 4  ;;  %s3609_s5 = scalar_lea.hbm %s3608_s16, 32  ;;  %s1101_s10 = int_to_ptr.vmem [resolvable:$true] %s1100_s10 }
  0xfa   : > { %p3610_p11 = scmp.ne.s32.totalorder %s3608_s16, %s3609_s5  ;;  %s3614_s30 = scalar_lea.hbm %s4582_s9, 32 }
  0xfb   : > { %p3615_p0 = scmp.lt.s32.totalorder %s3608_s16, %s4582_s9  ;;  %p3616_p2 = scmp.lt.s32.totalorder %s3614_s30, %s3609_s5 }
  0xfc   : > { %p3612_p12 = pnand %p3610_p11, %p4056_p8 }
  0xfd   : > { %p3617_p4 = por %p3616_p2, %p3615_p0 }
  0xfe   : > { %p3613_p13 = pneg %p3612_p12 }
 0x100   : > { %p3618_p7 = pnand %p3617_p4, %p3613_p13 }
 0x102   : > { %3621 = shalt.err (!%p3618_p7)
}
 0x103   : > { %3079 = dma.hbm_to_vmem [thread:$0]  (!%p4044_p6), %s4196_s17, 512, %s1101_s10, [#allocation25], %s3800_s18, %s3800_s18, %s3801_s2  }
 0x104   : > { %s2879_s27 = sadd.s32 4294967294, %s3761_s28   ;;  %s4222_s15 = sadd.s32 1, %s3761_s28  }
 0x105   : > { %s153_s11 = sadd.s32 1, %s3757_s26  ;;  %s150_s7 = ssub.s32 %s3761_s28, %s4222_s15 }
 0x106   : > { %p160_p8 = scmp.ne.s32.totalorder %s3757_s26, %s3753_s23  ;;  %p151_p9 = scmp.eq.s32.totalorder %s150_s7, 0 }
 0x107   : > { %p161_p10 = scmp.eq.s32.totalorder %s3761_s28, 0  ;;  %p166_p11 = scmp.ne.s32.totalorder %s3753_s23, %s3749_s22 }
 0x108   : > { %p862_p12 = scmp.eq.s32.totalorder %s4026_s1, 1  ;;  %p868_p0 = scmp.eq.s32.totalorder %s2879_s27, 1 }
 0x109   : > { %s4234_s12 = scalar_select %p151_p9, %s3757_s26, %s153_s11  }
 0x10a   : > { %p4238_p13 = por %p4549_p1, %p166_p11  ;;  %p4242_p6 = por %p862_p12, %p160_p8 }
 0x10b   : > { %p162_p2 = por %p161_p10, %p160_p8  ;;  %s1133_s18 = sand.u32 1, %s3757_s26  }
 0x10c   : > { %p4247_p4 = por %p868_p0, %p166_p11  ;;  %p3101_p7 = scmp.lt.s32.totalorder %s3761_s28, 2 }
 0x10d   : > { %s1139_s10 = scalar_lea.hbm %s3835_s13, %s3761_s28  ;;  %s1136_s5 = scalar_lea.vmem [#allocation3], %s1133_s18 }
 0x10e   : > { %s4594_s17 = scalar_select %p4247_p4, 1, 0 }
 0x10f   : > { %s1141_s16 = sshll.u32 %s1139_s10, 4  ;;  %s1143_s30 = sshll.u32 %s1136_s5, 4  ;;  %s1142_s16 = int_to_ptr.hbm [resolvable:$true] %s1141_s16  ;;  %s1144_s30 = int_to_ptr.vmem [resolvable:$true] %s1143_s30 }
 0x110   : > { %p4254_p9 = pnand %p3101_p7, %p162_p2  ;;  %s1134_s27 = scalar_lea.sflag [#allocation4], %s1133_s18 }
 0x111   : > { %s3637_s7 = sshra.s32 %s1142_s16, 4  ;;  %s3644_s4 = scalar_lea.hbm %s3835_s13, 2  ;;  %s3638_s7 = int_to_ptr.hbm [resolvable:$true] %s3637_s7 }
 0x112   : > { %s3639_s3 = scalar_lea.hbm %s3638_s7, 1  ;;  %p3641_p10 = pneg %p4254_p9 }
 0x113   : > { %p3640_p8 = scmp.ne.s32.totalorder %s3638_s7, %s3639_s3  ;;  %p3645_p0 = scmp.lt.s32.totalorder %s3638_s7, %s3835_s13 }
 0x114   : > { %p3646_p5 = scmp.lt.s32.totalorder %s3644_s4, %s3639_s3 }
 0x115   : > { %p3642_p11 = pnand %p3641_p10, %p3640_p8 }
 0x116   : > { %p3647_p1 = por %p3646_p5, %p3645_p0 }
 0x117   : > { %p3643_p12 = pneg %p3642_p11 }
 0x119   : > { %p3648_p4 = pnand %p3647_p1, %p3643_p12 }
 0x11b   : > { %3651 = shalt.err (!%p3648_p4)
}
 0x11c   : > { %3083 = dma.hbm_to_vmem [thread:$0]  (!%p4254_p9), %s1142_s16, 16, %s1144_s30, %s1134_s27  }
 0x11d   : > { %1152 = sbr.rel (%p4031_p3) target bundleno = 3052 (0xbec), region = 160  ;;  %s4267_s18 = sand.u32 (!%p4031_p3), 1, %s3753_s23  }
 0x11e   : > { %s1155_s5 = scalar_lea.sflag (!%p4031_p3), [#allocation4], %s4267_s18  ;;  %s1157_s6 = scalar_lea.vmem (!%p4031_p3), [#allocation3], %s4267_s18 }
 0x122   : > { %3712 = dma.done.wait (%p4238_p13), %s1155_s5, 16  }
 0x123   : > { %3714 = vsyncadd (%p4238_p13), %s1155_s5, 4294967280  ;;  %p4597_p1 = scmp.eq.s32.totalorder %s4026_s1, 0 }
 0x125   : > { %3716 = dma.done.wait (%p4597_p1), [#allocation7], 272   ;;  %p4598_p5 = pmov %p4597_p1 }
 0x126   : > { %p4599_p3 = pmov %p4597_p1 }
 0x127   : > { %3718 = vsyncadd (%p4598_p5), [#allocation7], 4294967024 }
 0x128   : > { %3720 = dma.done.wait (%p4599_p3), [#allocation10], 272   ;;  %p4600_p2 = pmov %p4597_p1 }
 0x129   : > { %p4601_p4 = pmov %p4597_p1 }
 0x12a   : > { %3722 = vsyncadd (%p4600_p2), [#allocation10], 4294967024 }
 0x12b   : > { %3724 = dma.done.wait (%p4601_p4), [#allocation13], 400   ;;  %p4602_p7 = pmov %p4597_p1 }
 0x12c   : > { %p4603_p13 = pmov %p4597_p1 }
 0x12d   : > { %3726 = vsyncadd (%p4602_p7), [#allocation13], 4294966896 }
 0x12e   : > { %3728 = dma.done.wait (%p4603_p13), [#allocation16], 32   ;;  %p4604_p9 = pmov %p4597_p1 }
 0x12f   : > { %p4605_p8 = pmov %p4597_p1 }
 0x130   : > { %3730 = vsyncadd (%p4604_p9), [#allocation16], 4294967264 }
 0x131   : > { %3732 = dma.done.wait (%p4605_p8), [#allocation19], 1024   ;;  %p4606_p10 = pmov %p4597_p1 }
 0x132   : > { %p4607_p11 = pmov %p4597_p1 }
 0x133   : > { %3734 = vsyncadd (%p4606_p10), [#allocation19], 4294966272 }
 0x134   : > { %3736 = dma.done.wait (%p4607_p11), [#allocation22], 6144   ;;  %p4608_p12 = pmov %p4597_p1 }
 0x135   : > { %p4609_p0 = pmov %p4597_p1 }
 0x136   : > { %3738 = vsyncadd (%p4608_p12), [#allocation22], 4294961152 }
 0x137   : > { %3740 = dma.done.wait (%p4609_p0), [#allocation25], 512   ;;  %p4610_p1 = pmov %p4609_p0 }
 0x138   : > { %s4611_s3 = sld [smem:[#allocation36_spill]]  ;;  %p1319_p5 = scmp.lt.s32.totalorder %s4026_s1, 1  ;;  %v1332_v0 = vld [vmem:[#allocation6 + $0x8] sm:$0xff]  ;;  %v1331_v1 = vld [vmem:[#allocation6] sm:$0xff]  ;;  %vm1337_vm0 = vcmask 130048   ;;  %v1369_v5 = vld [vmem:[#allocation9] sm:$0xff] }
 0x139   : > { %3742 = vsyncadd (%p4610_p1), [#allocation25], 4294966784  ;;  %s4612_s4 = sld [smem:[#allocation37_spill]]  ;;  %1358 = vmatpush.msra.mxu0 %v1332_v0  ;;  %2982 = vmatpush.msra.mxu3 %v1332_v0  ;;  %v1370_v4 = vld [vmem:[#allocation9 + $0x8] sm:$0xff]  ;;  %v3202_v8 = vld [vmem:[#allocation8] ss:$0 sm:$0xff] }
 0x13a   : > { %s1320_s0 = scalar_select %p1319_p5, %s4026_s1, 1  ;;  %1395 = vmatpush.msra.mxu1 %v1370_v4  ;;  %vm1433_vm1 = vcmask 261120   ;;  %v3813_v15 = vmov 32.0   ;;  %v1407_v18 = vld [vmem:[#allocation12 + $0x10] sm:$0xff]  ;;  %v1406_v19 = vld [vmem:[#allocation12 + $0x8] sm:$0xff]  ;;  %v1405_v21 = vld [vmem:[#allocation12] sm:$0xff] }
 0x13b   : > { %1359 = vmatpush.msra.mxu0 %v1331_v1  ;;  %2983 = vmatpush.msra.mxu3 %v1331_v1  ;;  %s4613_s27 = sld [smem:[#allocation43_spill]]  ;;  %3221 = vrcp.f32 %v3813_v15  ;;  %v1574_v22 = vld [vmem:[#allocation18 + $0x18] sm:$0xff]  ;;  %v1404_v23 = vld [vmem:[%s1157_s6] sm:$0x1]  ;;  %vm1409_vm2 = vcmask 195584   ;;  %v1573_v24 = vld [vmem:[#allocation18 + $0x10] sm:$0xff] }
 0x13c   : > { %s2979_s16 = sshll.u32 %s1320_s0, 4  ;;  %1396 = vmatpush.msra.mxu1 %v1369_v5  ;;  %1426 = vmatpush.msra.mxu2 %v1407_v18  ;;  %v3203_v26 = vld [vmem:[#allocation11] ss:$0 sm:$0xff]  ;;  %v1572_v27 = vld [vmem:[#allocation18 + $0x8] sm:$0xff]  ;;  %s4614_s6 = sld [smem:[#allocation41_spill]]  ;;  %vm1694_vm4 = vcmask 1043456  }
 0x13d   : > { %1591 = vmatpush.msrb.mxu0 %v1574_v22  ;;  %v1571_v31 = vld [vmem:[#allocation18] sm:$0xff]  ;;  %s4615_s7 = sld [smem:[#allocation45_spill]]  ;;  %vm1639_vm11 = vcmask 97280   ;;  %s2612_s8 = scalar_lea.sflag [#allocation5], %s4267_s18 }
 0x13e   : > { %s1323_s30 = scalar_lea.vmem %s4611_s3, %s2979_s16  ;;  %1427 = vmatpush.msra.mxu2 %v1406_v19  ;;  %s4616_s10 = sld [smem:[#allocation44_spill]]  ;;  %v3205_v19 = vld [vmem:[#allocation17] ss:$0 sm:$0xff] }
 0x13f   : > { %v1329_v2 = vld [vmem:[%s1323_s30] sm:$0xff]  ;;  %v1330_v3 = vld [vmem:[%s1323_s30 + $0x8] sm:$0xff]  ;;  %s1328_s11 = scalar_lea.vmem %s4612_s4, %s2979_s16  ;;  %1592 = vmatpush.msrb.mxu0 %v1573_v24  ;;  %s4617_s5 = sld [smem:[#allocation42_spill]] }
 0x140   : > { %2914 = vmatmul.msk.f32.vlgmr.msra.gmra.mxu0 %vm1337_vm0, %v1329_v2  ;;  %2915 = vmatmul.msk.f32.vlgmr.msra.gmra.mxu3 %vm1337_vm0, %v1330_v3  ;;  %v1367_v6 = vld [vmem:[%s1328_s11] sm:$0xff]  ;;  %v1368_v7 = vld [vmem:[%s1328_s11 + $0x8] sm:$0xf]  ;;  %s4618_s3 = sld [smem:[#allocation47_spill]] }
 0x141   : > { %2916 = vmatmul.msk.f32.vlgmr.msra.gmra.mxu1 %vm1337_vm0, %v1367_v6  ;;  %v3222_v16 = vpop.eup %3221  ;;  %v1537_v25 = vld [vmem:[%s4613_s27 + $0x18] sm:$0xff]  ;;  %1428 = vmatpush.msra.mxu2 %v1405_v21  ;;  %v1536_v29 = vld [vmem:[%s4613_s27 + $0x10] sm:$0xff]  ;;  %v1535_v33 = vld [vmem:[%s4613_s27 + $0x8] sm:$0xff]  ;;  %s4619_s4 = sld [smem:[#allocation48_spill]] }
 0x142   : > { %v1441_v17 = vmul.f32 32.0, %v3222_v16  ;;  %2918 = vmatmul.msk.f32.vlgmr.msra.gmra.mxu2 %vm1409_vm2, %v1404_v23  ;;  %1593 = vmatpush.msrb.mxu0 %v1572_v27  ;;  %v1534_v35 = vld [vmem:[%s4613_s27] sm:$0xff]  ;;  %vm1445_vm3 = vweird.f32 %v3222_v16  ;;  %v1500_v49 = vld [vmem:[%s4614_s6 + $0x18] sm:$0xff]  ;;  %v1499_v50 = vld [vmem:[%s4614_s6 + $0x10] sm:$0xff]  ;;  %s4620_s0 = sld [smem:[#allocation49_spill]] }
 0x143   : > { %1560 = vmatpush.msrb.mxu2 %v1537_v25  ;;  %1523 = vmatpush.msrb.mxu3 %v1500_v49  ;;  %v1498_v51 = vld [vmem:[%s4614_s6 + $0x8] sm:$0xff]  ;;  %v1497_v52 = vld [vmem:[%s4614_s6] sm:$0xff]  ;;  %s4621_s16 = sld [smem:[#allocation51_spill]] }
 0x144   : > { %v1442_v20 = vsub.f32 1.0, %v1441_v17  ;;  %1594 = vmatpush.msrb.mxu0 %v1571_v31  ;;  %v3206_v60 = vld [vmem:[%s4615_s7] ss:$0 sm:$0xff]  ;;  %s4622_s30 = sld [smem:[#allocation50_spill]] }
 0x145   : > { %1561 = vmatpush.msrb.mxu2 %v1536_v29  ;;  %1524 = vmatpush.msrb.mxu3 %v1499_v50  ;;  %s4623_s11 = sld [smem:[#allocation53_spill]] }
 0x146   : > { %v1443_v28 = vmul.f32 %v3222_v16, %v1442_v20  ;;  %s4624_s7 = sld [smem:[#allocation52_spill]] }
 0x147   : > { %1562 = vmatpush.msrb.mxu2 %v1535_v33  ;;  %1525 = vmatpush.msrb.mxu3 %v1498_v51 }
 0x148   : > { %v1444_v34 = vadd.f32 %v3222_v16, %v1443_v28 }
 0x149   : > { %2917 = vmatmul.msk.f32.gmra.mxu1 %vm1337_vm0, %v1368_v7  ;;  %1563 = vmatpush.msrb.mxu2 %v1534_v35  ;;  %v3207_v7 = vld [vmem:[%s4616_s10] ss:$0 sm:$0xff]  ;;  %s4625_s10 = sld [smem:[#allocation54_spill]] }
 0x14a   : > { %v4322_v36 = vsel %vm1445_vm3, %v3222_v16, %v1444_v34  ;;  %1526 = vmatpush.msrb.mxu3 %v1497_v52  ;;  %v1724_v52 = vld [vmem:[#allocation20 + $0x18] sm:$0xff] }
 0x14b   : > { %1747 = vmatpush.msra.mxu2 %v1724_v52  ;;  %v1902_v52 = vld [vmem:[#allocation21 + $0x48] sm:$0xff] }
 0x1bd   : > { %v1361_v9 = vpop.f32.mrf.mxu0 }
 0x1be   : > { %v4307_v10 = vadd.f32 %v3202_v8, %v1361_v9  ;;  %v1398_v30 = vpop.f32.mrf.mxu1 }
 0x1bf   : > { %v1399_v32 = vadd.f32 %v3203_v26, %v1398_v30  ;;  %v3208_v30 = vld [vmem:[%s4617_s5] ss:$0 sm:$0xff]  ;;  %s4626_s5 = sld [smem:[#allocation55_spill]] }
 0x1c0   : > { %v1434_v11 = vsel %vm1433_vm1, %v4307_v10, 0.0 }
 0x1c1   : > { %1435 = vadd.xlane.f32.xlu0 %v1434_v11  ;;  %2923 = vmatmul.msk.f32.vlgmr.msrb.gmra.mxu0 %vm1433_vm1, %v1399_v32 }
 0x1c2   : > { %2921 = vmatmul.msk.f32.vlgmr.msrb.gmra.mxu2 %vm1433_vm1, %v1399_v32 }
 0x1c3   : > { %v1364_v12 = vpop.f32.mrf.mxu3 }
 0x1c4   : > { %v4311_v13 = vadd.f32 %v3202_v8, %v1364_v12  ;;  %v3204_v12 = vld [vmem:[#allocation15] ss:$0 sm:$0xff] }
 0x1c5   : > { %v4342_v56 = vpop.f32.mrf.mxu2 }
 0x1c6   : > { %v1437_v14 = vsel %vm1433_vm1, %v4311_v13, 0.0  ;;  %v1401_v37 = vpop.f32.mrf.mxu1 }
 0x1c7   : > { %v1402_v39 = vadd.f32 %v3203_v26, %v1401_v37 }
 0x1c9   : > { %1438 = vadd.xlane.f32.xlu0 %v1437_v14  ;;  %2924 = vmatmul.msk.f32.gmra.mxu0 %vm1433_vm1, %v1402_v39 }
 0x1ca   : > { %2922 = vmatmul.msk.f32.gmra.mxu2 %vm1433_vm1, %v1402_v39 }
 0x234   : > { %v1436_v38 = vpop.xlane.xlu0 %1435 }
 0x235   : > { %v1447_v40 = vmul.f32 %v4322_v36, %v1436_v38 }
 0x237   : > { %v1449_v41 = vsub.f32 %v4307_v10, %v1447_v40 }
 0x239   : > { %v1451_v42 = vmul.f32 %v1449_v41, %v1449_v41 }
 0x23b   : > { %v1453_v43 = vsel %vm1433_vm1, %v1451_v42, 0.0 }
 0x23c   : > { %1454 = vadd.xlane.f32.xlu1 %v1453_v43  ;;  %v1439_v44 = vpop.xlane.xlu0 %1438 }
 0x23d   : > { %v1448_v45 = vmul.f32 %v4322_v36, %v1439_v44 }
 0x23e   : > { %v1596_v57 = vpop.f32.mrf.mxu0 }
 0x23f   : > { %v4332_v46 = vsub.f32 %v4311_v13, %v1448_v45  ;;  %v1597_v3 = vadd.f32 %v3206_v60, %v1596_v57  ;;  %v1721_v57 = vld [vmem:[#allocation20] sm:$0xff] }
 0x241   : > { %v1452_v47 = vmul.f32 %v4332_v46, %v4332_v46 }
 0x243   : > { %v1456_v48 = vsel %vm1433_vm1, %v1452_v47, 0.0 }
 0x244   : > { %1457 = vadd.xlane.f32.xlu1 %v1456_v48 }
 0x245   : > { %v1565_v0 = vpop.f32.mrf.mxu2 }
 0x246   : > { %v1599_v1 = vpop.f32.mrf.mxu0  ;;  %v1566_v21 = vadd.f32 %v3207_v7, %v1565_v0 }
 0x247   : > { %v1600_v4 = vadd.f32 %v3206_v60, %v1599_v1 }
 0x249   : > { %2929 = vmatpush.msk.msra.mxu3 %vm1694_vm4, %v1600_v4 }
 0x24b   : > { %1713 = vmatpush.msra.mxu3 %v1597_v3 }
 0x24d   : > { %v1568_v14 = vpop.f32.mrf.mxu2 }
 0x24e   : > { %v1569_v17 = vadd.f32 %v3207_v7, %v1568_v14 }
 0x250   : > { %2925 = vmatpush.xpose.msk.msrb.mxu1 %vm1433_vm1, %v1569_v17 }
 0x254   : > { %2926 = vmatpush.xpose.msk.msrb.mxu1 %vm1433_vm1, %v1566_v21  ;;  %v3209_v21 = vld [vmem:[%s4618_s3] ss:$0 sm:$0xff]  ;;  %s4627_s3 = sld [smem:[#allocation56_spill]] }
 0x2af   : > { %v1455_v53 = vpop.xlane.xlu1 %1454 }
 0x2b0   : > { %v1459_v54 = vmul.f32 %v1455_v53, %v4322_v36  ;;  %v1723_v53 = vld [vmem:[#allocation20 + $0x10] sm:$0xff] }
 0x2b1   : > { %1748 = vmatpush.msra.mxu2 %v1723_v53  ;;  %v1940_v53 = vld [vmem:[#allocation21 + $0x68] sm:$0xff] }
 0x2b2   : > { %v1461_v55 = vadd.f32 1e-05, %v1459_v54  ;;  %v1722_v54 = vld [vmem:[#allocation20 + $0x8] sm:$0xff] }
 0x2b3   : > { %1749 = vmatpush.msra.mxu2 %v1722_v54 }
 0x2b4   : > { %3223 = vrsqrt.f32 %v1461_v55  ;;  %vm1469_vm6 = vweird.f32 %v1461_v55 }
 0x2b5   : > { %1750 = vmatpush.msra.mxu2 %v1721_v57  ;;  %v1863_v57 = vld [vmem:[#allocation21 + $0x20] sm:$0xff] }
 0x2b7   : > { %v1458_v58 = vpop.xlane.xlu1 %1457 }
 0x2b8   : > { %v1460_v59 = vmul.f32 %v1458_v58, %v4322_v36 }
 0x2ba   : > { %v3224_v61 = vpop.eup %3223  ;;  %v1462_v62 = vadd.f32 1e-05, %v1460_v59 }
 0x2bb   : > { %v1464_v63 = vmul.f32 %v3224_v61, %v1461_v55  ;;  %vm1470_vm5 = vweird.f32 %v3224_v61 }
 0x2bc   : > { %3225 = vrsqrt.f32 %v1462_v62  ;;  %vm1471_vm7 = vmor %vm1469_vm6, %vm1470_vm5  ;;  %vm1479_vm9 = vweird.f32 %v1462_v62 }
 0x2bd   : > { %v1465_v2 = vmul.f32 %v3224_v61, %v1464_v63 }
 0x2bf   : > { %v1466_v5 = vmul.f32 0.5, %v1465_v2 }
 0x2c1   : > { %v1467_v6 = vsub.f32 1.5, %v1466_v5 }
 0x2c2   : > { %v3226_v8 = vpop.eup %3225 }
 0x2c3   : > { %v1468_v9 = vmul.f32 %v3224_v61, %v1467_v6  ;;  %v1474_v11 = vmul.f32 %v3226_v8, %v1462_v62  ;;  %vm1480_vm8 = vweird.f32 %v3226_v8 }
 0x2c4   : > { %vm1481_vm10 = vmor %vm1479_vm9, %vm1480_vm8 }
 0x2c5   : > { %v1472_v15 = vsel %vm1471_vm7, %v3224_v61, %v1468_v9  ;;  %v1475_v16 = vmul.f32 %v3226_v8, %v1474_v11 }
 0x2c6   : > { %v1483_v18 = vmul.f32 %v1472_v15, %v1449_v41 }
 0x2c7   : > { %v1476_v20 = vmul.f32 0.5, %v1475_v16 }
 0x2c8   : > { %v1489_v22 = vmul.f32 %v3204_v12, %v1483_v18 }
 0x2c9   : > { %v1477_v23 = vsub.f32 1.5, %v1476_v20 }
 0x2ca   : > { %v1495_v24 = vadd.f32 %v3205_v19, %v1489_v22 }
 0x2cb   : > { %v1478_v25 = vmul.f32 %v3226_v8, %v1477_v23 }
 0x2cc   : > { %2919 = vmatmul.msk.f32.vlgmr.msrb.gmra.mxu3 %vm1433_vm1, %v1495_v24 }
 0x2cd   : > { %v1482_v26 = vsel %vm1481_vm10, %v3226_v8, %v1478_v25 }
 0x2ce   : > { %v1484_v27 = vmul.f32 %v1482_v26, %v4332_v46 }
 0x2d0   : > { %v1490_v28 = vmul.f32 %v3204_v12, %v1484_v27 }
 0x2d2   : > { %v1496_v29 = vadd.f32 %v3205_v19, %v1490_v28 }
 0x2d4   : > { %2920 = vmatmul.msk.f32.gmra.mxu3 %vm1433_vm1, %v1496_v29 }
 0x34f   : > { %v1528_v31 = vpop.f32.mrf.mxu3 }
 0x350   : > { %v1529_v32 = vadd.f32 %v3208_v30, %v1528_v31 }
 0x352   : > { %2927 = vmatmul.msk.f32.vlgmr.msrb.gmra.mxu1 %vm1433_vm1, %v1529_v32 }
 0x357   : > { %v1531_v33 = vpop.f32.mrf.mxu3 }
 0x358   : > { %v1532_v34 = vadd.f32 %v3208_v30, %v1531_v33  ;;  %v3814_v30 = vmov 0.0  }
 0x359   : > { %1816 = vst.msk [vmem:[#allocation2] sm:$0xff] %vm1433_vm1, %v3814_v30 }
 0x35a   : > { %2928 = vmatmul.msk.f32.gmra.mxu1 %vm1433_vm1, %v1532_v34  ;;  %1817 = vst.msk [vmem:[#allocation2 + $0x8] sm:$0xff] %vm1433_vm1, %v3814_v30 }
 0x35b   : > { %1818 = vst.msk [vmem:[#allocation2 + $0x10] sm:$0xff] %vm1433_vm1, %v3814_v30 }
 0x3cf   : > { %v1631_v35 = vpop.f32.mrf.mxu1 }
 0x3d0   : > { %v1637_v37 = vmul.f32 0.17677669, %v1631_v35 }
 0x3d2   : > { %v1640_v38 = vsel %vm1639_vm11, %v1637_v37, -inf }
 0x3d3   : > { %1641 = vmax.xlane.f32.xlu2 %v1640_v38 }
 0x3d7   : > { %v1634_v39 = vpop.f32.mrf.mxu1 }
 0x3d8   : > { %v1638_v40 = vmul.f32 0.17677669, %v1634_v39 }
 0x3da   : > { %v1643_v41 = vsel %vm1639_vm11, %v1638_v40, -inf }
 0x3db   : > { %1644 = vmax.xlane.f32.xlu2 %v1643_v41  ;;  %v1904_v41 = vld [vmem:[#allocation21 + $0x58] sm:$0xff] }
 0x3dc   : > { %1923 = vmatpush.msrb.mxu3 %v1904_v41 }
 0x446   : > { %v1642_v42 = vpop.xlane.xlu2 %1641 }
 0x447   : > { %v1646_v43 = vsub.f32 %v1637_v37, %v1642_v42  ;;  %v1942_v42 = vld [vmem:[#allocation21 + $0x78] sm:$0xff] }
 0x448   : > { %1961 = vmatpush.msrb.mxu2 %v1942_v42 }
 0x449   : > { %v1648_v44 = vmul.f32 1.442695, %v1646_v43  ;;  %v1866_v43 = vld [vmem:[#allocation21 + $0x38] sm:$0xff] }
 0x44a   : > { %1885 = vmatpush.msra.mxu1 %v1866_v43  ;;  %v2132_v43 = vld [vmem:[#allocation21 + $0x118] sm:$0xff] }
 0x44b   : > { %3227 = vpow2.f32 %v1648_v44  ;;  %v1825_v44 = vld [vmem:[#allocation21 + $0x10] sm:$0xff] }
 0x44e   : > { %v1645_v45 = vpop.xlane.xlu2 %1644 }
 0x44f   : > { %v1647_v46 = vsub.f32 %v1638_v40, %v1645_v45  ;;  %v1826_v40 = vld [vmem:[#allocation21 + $0x18] sm:$0xff]  ;;  %v1903_v45 = vld [vmem:[#allocation21 + $0x50] sm:$0xff] }
 0x450   : > { %1849 = vmatpush.msra.mxu0 %v1826_v40  ;;  %1924 = vmatpush.msrb.mxu3 %v1903_v45 }
 0x451   : > { %v3228_v47 = vpop.eup %3227  ;;  %v1650_v48 = vmul.f32 1.442695, %v1647_v46  ;;  %v1865_v46 = vld [vmem:[#allocation21 + $0x30] sm:$0xff] }
 0x452   : > { %v1652_v49 = vsel %vm1639_vm11, %v3228_v47, 0.0  ;;  %1850 = vmatpush.msra.mxu0 %v1825_v44  ;;  %1886 = vmatpush.msra.mxu1 %v1865_v46 }
 0x453   : > { %3229 = vpow2.f32 %v1650_v48  ;;  %1653 = vadd.xlane.f32.xlu0 %v1652_v49  ;;  %v1941_v48 = vld [vmem:[#allocation21 + $0x70] sm:$0xff]  ;;  %1925 = vmatpush.msrb.mxu3 %v1902_v52 }
 0x454   : > { %1962 = vmatpush.msrb.mxu2 %v1941_v48  ;;  %v2129_v48 = vld [vmem:[#allocation21 + $0x100] sm:$0xff] }
 0x456   : > { %1963 = vmatpush.msrb.mxu2 %v1940_v53 }
 0x459   : > { %v3230_v50 = vpop.eup %3229 }
 0x45a   : > { %v1655_v51 = vsel %vm1639_vm11, %v3230_v50, 0.0 }
 0x45b   : > { %1656 = vadd.xlane.f32.xlu1 %v1655_v51  ;;  %v1864_v51 = vld [vmem:[#allocation21 + $0x28] sm:$0xff] }
 0x45c   : > { %1887 = vmatpush.msra.mxu1 %v1864_v51 }
 0x45e   : > { %1888 = vmatpush.msra.mxu1 %v1863_v57 }
 0x4c6   : > { %v1654_v55 = vpop.xlane.xlu0 %1653 }
 0x4c7   : > { %3231 = vrcp.f32 %v1654_v55  ;;  %v1669_v62 = vand.u32 2147483648, %v1654_v55  ;;  %v1667_v0 = vand.u32 2147483647, %v1654_v55  ;;  %vm1663_vm13 = vweird.f32 %v1654_v55 }
 0x4c9   : > { %v1670_v3 = vor.u32 1.1754944e-38, %v1669_v62  ;;  %vm1668_vm15 = vcmp.eq.f32.partialorder %v1667_v0, 8.507059e+37  ;;  %v2056_v62 = vld [vmem:[#allocation21 + $0xd8] sm:$0xff] }
 0x4cd   : > { %v3232_v58 = vpop.eup %3231 }
 0x4ce   : > { %v1659_v59 = vmul.f32 %v3232_v58, %v1654_v55  ;;  %v1657_v60 = vpop.xlane.xlu1 %1656  ;;  %vm1664_vm12 = vweird.f32 %v3232_v58  ;;  %v1823_v55 = vld [vmem:[#allocation21] sm:$0xff] }
 0x4cf   : > { %3233 = vrcp.f32 %v1657_v60  ;;  %vm1665_vm14 = vmor %vm1663_vm13, %vm1664_vm12  ;;  %v1684_v9 = vand.u32 2147483648, %v1657_v60  ;;  %v1682_v12 = vand.u32 2147483647, %v1657_v60  ;;  %vm1678_vm2 = vweird.f32 %v1657_v60 }
 0x4d0   : > { %v1660_v61 = vsub.f32 1.0, %v1659_v59  ;;  %v1939_v59 = vld [vmem:[#allocation21 + $0x60] sm:$0xff] }
 0x4d1   : > { %v1685_v15 = vor.u32 1.1754944e-38, %v1684_v9  ;;  %vm1683_vm4 = vcmp.eq.f32.partialorder %v1682_v12, 8.507059e+37  ;;  %1964 = vmatpush.msrb.mxu2 %v1939_v59  ;;  %v2017_v9 = vld [vmem:[#allocation21 + $0xb0] sm:$0xff] }
 0x4d2   : > { %v1661_v63 = vmul.f32 %v3232_v58, %v1660_v61  ;;  %v1979_v61 = vld [vmem:[#allocation21 + $0x90] sm:$0xff] }
 0x4d4   : > { %v1662_v1 = vadd.f32 %v3232_v58, %v1661_v63 }
 0x4d5   : > { %v3234_v2 = vpop.eup %3233 }
 0x4d6   : > { %v1666_v4 = vsel %vm1665_vm14, %v3232_v58, %v1662_v1  ;;  %v1674_v5 = vmul.f32 %v3234_v2, %v1657_v60  ;;  %vm1679_vm0 = vweird.f32 %v3234_v2  ;;  %v1901_v58 = vld [vmem:[#allocation21 + $0x40] sm:$0xff]  ;;  %v1980_v60 = vld [vmem:[#allocation21 + $0x98] sm:$0xff] }
 0x4d7   : > { %v1671_v6 = vsel %vm1668_vm15, %v1670_v3, %v1666_v4  ;;  %vm1680_vm3 = vmor %vm1678_vm2, %vm1679_vm0  ;;  %1926 = vmatpush.msrb.mxu3 %v1901_v58 }
 0x4d8   : > { %v1675_v7 = vsub.f32 1.0, %v1674_v5  ;;  %v1672_v8 = vmul.f32 %v3228_v47, %v1671_v6  ;;  %v1978_v5 = vld [vmem:[#allocation21 + $0x88] sm:$0xff]  ;;  %v2094_v6 = vld [vmem:[#allocation21 + $0xf8] sm:$0xff] }
 0x4da   : > { %v1676_v11 = vmul.f32 %v3234_v2, %v1675_v7  ;;  %2930 = vmatmul.msk.f32.vlgmr.msra.gmra.mxu3 %vm1639_vm11, %v1672_v8  ;;  %v2018_v7 = vld [vmem:[#allocation21 + $0xb8] sm:$0xff]  ;;  %v2055_v8 = vld [vmem:[#allocation21 + $0xd0] sm:$0xff] }
 0x4db   : > { %2075 = vmatpush.msra.mxu3 %v2056_v62  ;;  %2037 = vmatpush.msrb.mxu1 %v2018_v7  ;;  %v2173_v7 = vld [vmem:[%s4621_s16 + $0x38] sm:$0xff] }
 0x4dc   : > { %v1677_v14 = vadd.f32 %v3234_v2, %v1676_v11  ;;  %v2093_v11 = vld [vmem:[#allocation21 + $0xf0] sm:$0xff] }
 0x4dd   : > { %2076 = vmatpush.msra.mxu3 %v2055_v8  ;;  %2038 = vmatpush.msrb.mxu1 %v2017_v9  ;;  %v2172_v8 = vld [vmem:[%s4621_s16 + $0x30] sm:$0xff]  ;;  %v2171_v9 = vld [vmem:[%s4621_s16 + $0x28] sm:$0xff] }
 0x4de   : > { %v1681_v16 = vsel %vm1680_vm3, %v3234_v2, %v1677_v14  ;;  %v1977_v14 = vld [vmem:[#allocation21 + $0x80] sm:$0xff] }
 0x4df   : > { %v1686_v17 = vsel %vm1683_vm4, %v1685_v15, %v1681_v16  ;;  %v2054_v15 = vld [vmem:[#allocation21 + $0xc8] sm:$0xff] }
 0x4e0   : > { %v1687_v18 = vmul.f32 %v3230_v50, %v1686_v17  ;;  %v1824_v50 = vld [vmem:[#allocation21 + $0x8] sm:$0xff]  ;;  %2077 = vmatpush.msra.mxu3 %v2054_v15 }
 0x4e1   : > { %1851 = vmatpush.msra.mxu0 %v1824_v50  ;;  %v2016_v16 = vld [vmem:[#allocation21 + $0xa8] sm:$0xff] }
 0x4e2   : > { %2931 = vmatmul.msk.f32.gmra.mxu3 %vm1639_vm11, %v1687_v18  ;;  %v2092_v17 = vld [vmem:[#allocation21 + $0xe8] sm:$0xff]  ;;  %v2053_v18 = vld [vmem:[#allocation21 + $0xc0] sm:$0xff]  ;;  %2039 = vmatpush.msrb.mxu1 %v2016_v16  ;;  %vm2216_vm11 = vcmask 254976   ;;  %v2168_v16 = vld [vmem:[%s4621_s16 + $0x10] sm:$0xff] }
 0x4e3   : > { %1852 = vmatpush.msra.mxu0 %v1823_v55  ;;  %2078 = vmatpush.msra.mxu3 %v2053_v18  ;;  %v2166_v18 = vld [vmem:[%s4621_s16] sm:$0xff] }
 0x4e5   : > { %1999 = vmatpush.msrb.mxu0 %v1980_v60 }
 0x4e7   : > { %2000 = vmatpush.msrb.mxu0 %v1979_v61 }
 0x4e9   : > { %2001 = vmatpush.msrb.mxu0 %v1978_v5  ;;  %v2175_v5 = vld [vmem:[%s4621_s16 + $0x48] sm:$0xff] }
 0x4eb   : > { %2002 = vmatpush.msrb.mxu0 %v1977_v14  ;;  %v2169_v14 = vld [vmem:[%s4621_s16 + $0x18] sm:$0xff] }
 0x55d   : > { %v1715_v19 = vpop.f32.mrf.mxu3 }
 0x55e   : > { %2932 = vmatmul.msk.f32.vlgmr.msra.gmra.mxu2 %vm1433_vm1, %v1715_v19 }
 0x55f   : > { %2113 = vmatpush.msra.mxu2 %v2094_v6  ;;  %v2174_v6 = vld [vmem:[%s4621_s16 + $0x40] sm:$0xff] }
 0x561   : > { %2114 = vmatpush.msra.mxu2 %v2093_v11  ;;  %v2170_v11 = vld [vmem:[%s4621_s16 + $0x20] sm:$0xff] }
 0x563   : > { %2115 = vmatpush.msra.mxu2 %v2092_v17  ;;  %v2167_v17 = vld [vmem:[%s4621_s16 + $0x8] sm:$0xff] }
 0x565   : > { %v1718_v20 = vpop.f32.mrf.mxu3 }
 0x566   : > { %2933 = vmatmul.msk.f32.gmra.mxu2 %vm1433_vm1, %v1718_v20  ;;  %v2091_v20 = vld [vmem:[#allocation21 + $0xe0] sm:$0xff] }
 0x567   : > { %2116 = vmatpush.msra.mxu2 %v2091_v20 }
 0x5e1   : > { %v1752_v22 = vpop.f32.mrf.mxu2 }
 0x5e2   : > { %v1753_v23 = vadd.f32 %v3209_v21, %v1752_v22  ;;  %v2015_v22 = vld [vmem:[#allocation21 + $0xa0] sm:$0xff] }
 0x5e3   : > { %2040 = vmatpush.msrb.mxu1 %v2015_v22 }
 0x5e4   : > { %v4365_v24 = vadd.f32 %v1753_v23, %v4307_v10 }
 0x5e6   : > { %v1760_v25 = vsel %vm1433_vm1, %v4365_v24, 0.0 }
 0x5e7   : > { %1761 = vadd.xlane.f32.xlu2 %v1760_v25 }
 0x5e9   : > { %v1755_v26 = vpop.f32.mrf.mxu2 }
 0x5ea   : > { %v1756_v27 = vadd.f32 %v3209_v21, %v1755_v26  ;;  %v3210_v26 = vld [vmem:[%s4619_s4] ss:$0 sm:$0xff]  ;;  %s4628_s4 = sld [smem:[#allocation58_spill]] }
 0x5ec   : > { %v4370_v28 = vadd.f32 %v1756_v27, %v4311_v13 }
 0x5ee   : > { %v1763_v29 = vsel %vm1433_vm1, %v4370_v28, 0.0 }
 0x5ef   : > { %1764 = vadd.xlane.f32.xlu0 %v1763_v29 }
 0x65a   : > { %v1762_v10 = vpop.xlane.xlu2 %1761 }
 0x65b   : > { %v1766_v31 = vmul.f32 %v1762_v10, %v4322_v36  ;;  %v3211_v10 = vld [vmem:[%s4620_s0] ss:$0 sm:$0xff]  ;;  %s4629_s0 = sld [smem:[#allocation59_spill]] }
 0x65d   : > { %v4382_v13 = vsub.f32 %v4365_v24, %v1766_v31 }
 0x65f   : > { %v1770_v32 = vmul.f32 %v4382_v13, %v4382_v13 }
 0x661   : > { %v1772_v33 = vsel %vm1433_vm1, %v1770_v32, 0.0 }
 0x662   : > { %1773 = vadd.xlane.f32.xlu1 %v1772_v33  ;;  %v1765_v34 = vpop.xlane.xlu0 %1764 }
 0x663   : > { %v1767_v35 = vmul.f32 %v1765_v34, %v4322_v36 }
 0x665   : > { %v4389_v37 = vsub.f32 %v4370_v28, %v1767_v35 }
 0x667   : > { %v1771_v38 = vmul.f32 %v4389_v37, %v4389_v37 }
 0x669   : > { %v1775_v39 = vsel %vm1433_vm1, %v1771_v38, 0.0 }
 0x66a   : > { %1776 = vadd.xlane.f32.xlu2 %v1775_v39 }
 0x6d5   : > { %v1774_v47 = vpop.xlane.xlu1 %1773 }
 0x6d6   : > { %v1778_v49 = vmul.f32 %v1774_v47, %v4322_v36  ;;  %v2131_v47 = vld [vmem:[#allocation21 + $0x110] sm:$0xff] }
 0x6d8   : > { %v1780_v54 = vadd.f32 1e-05, %v1778_v49 }
 0x6da   : > { %3235 = vrsqrt.f32 %v1780_v54  ;;  %vm1788_vm6 = vweird.f32 %v1780_v54 }
 0x6dd   : > { %v1777_v63 = vpop.xlane.xlu2 %1776 }
 0x6de   : > { %v1779_v0 = vmul.f32 %v1777_v63, %v4322_v36  ;;  %v2181_v63 = vld [vmem:[%s4621_s16 + $0x78] sm:$0xff] }
 0x6e0   : > { %v3236_v1 = vpop.eup %3235  ;;  %v1781_v2 = vadd.f32 1e-05, %v1779_v0  ;;  %v2180_v0 = vld [vmem:[%s4621_s16 + $0x70] sm:$0xff] }
 0x6e1   : > { %v1783_v3 = vmul.f32 %v3236_v1, %v1780_v54  ;;  %vm1789_vm5 = vweird.f32 %v3236_v1 }
 0x6e2   : > { %3237 = vrsqrt.f32 %v1781_v2  ;;  %vm1790_vm7 = vmor %vm1788_vm6, %vm1789_vm5  ;;  %vm1798_vm9 = vweird.f32 %v1781_v2 }
 0x6e3   : > { %v1784_v4 = vmul.f32 %v3236_v1, %v1783_v3  ;;  %v2177_v3 = vld [vmem:[%s4621_s16 + $0x58] sm:$0xff] }
 0x6e5   : > { %v1785_v12 = vmul.f32 0.5, %v1784_v4  ;;  %v2176_v4 = vld [vmem:[%s4621_s16 + $0x50] sm:$0xff] }
 0x6e7   : > { %v1786_v19 = vsub.f32 1.5, %v1785_v12 }
 0x6e8   : > { %v3238_v21 = vpop.eup %3237 }
 0x6e9   : > { %v1787_v23 = vmul.f32 %v3236_v1, %v1786_v19  ;;  %v1793_v25 = vmul.f32 %v3238_v21, %v1781_v2  ;;  %vm1799_vm8 = vweird.f32 %v3238_v21  ;;  %v2178_v2 = vld [vmem:[%s4621_s16 + $0x60] sm:$0xff] }
 0x6ea   : > { %vm1800_vm10 = vmor %vm1798_vm9, %vm1799_vm8  ;;  %v3212_v19 = vld [vmem:[%s4622_s30] ss:$0 sm:$0xff]  ;;  %s4630_s30 = sld [smem:[#allocation60_spill]]  ;;  %vm2608_vm9 = vcmask 654336  }
 0x6eb   : > { %v1791_v27 = vsel %vm1790_vm7, %v3236_v1, %v1787_v23  ;;  %v1794_v29 = vmul.f32 %v3238_v21, %v1793_v25  ;;  %v2179_v1 = vld [vmem:[%s4621_s16 + $0x68] sm:$0xff] }
 0x6ec   : > { %v1802_v31 = vmul.f32 %v1791_v27, %v4382_v13  ;;  %v2225_v27 = vld [vmem:[%s4623_s11 + $0x18] sm:$0xff] }
 0x6ed   : > { %v1795_v32 = vmul.f32 0.5, %v1794_v29 }
 0x6ee   : > { %v1808_v33 = vmul.f32 %v3210_v26, %v1802_v31 }
 0x6ef   : > { %v1796_v34 = vsub.f32 1.5, %v1795_v32 }
 0x6f0   : > { %v1814_v35 = vadd.f32 %v3211_v10, %v1808_v33 }
 0x6f1   : > { %v1797_v38 = vmul.f32 %v3238_v21, %v1796_v34 }
 0x6f2   : > { %1819 = vst.msk [vmem:[#allocation2 + $0x4] sm:$0xff] %vm1433_vm1, %v1814_v35 }
 0x6f3   : > { %v1801_v39 = vsel %vm1800_vm10, %v3238_v21, %v1797_v38 }
 0x6f4   : > { %v1803_v40 = vmul.f32 %v1801_v39, %v4389_v37  ;;  %v2130_v37 = vld [vmem:[#allocation21 + $0x108] sm:$0xff] }
 0x6f6   : > { %v1809_v41 = vmul.f32 %v3210_v26, %v1803_v40 }
 0x6f8   : > { %v1815_v42 = vadd.f32 %v3211_v10, %v1809_v41 }
 0x6f9   : > { %v1821_v44 = vld [vmem:[#allocation2] sm:$0xff] }
 0x6fa   : > { %v1860_v45 = vld [vmem:[#allocation2 + $0x1] sm:$0xff]  ;;  %1820 = vst.msk [vmem:[#allocation2 + $0xc] sm:$0xff] %vm1433_vm1, %v1815_v42  ;;  %2934 = vmatmul.msk.f32.vlgmr.msra.gmra.mxu0 %vm1433_vm1, %v1821_v44 }
 0x6fb   : > { %v1898_v46 = vld [vmem:[#allocation2 + $0x2] sm:$0xff]  ;;  %2936 = vmatmul.msk.f32.vlgmr.msra.gmra.mxu1 %vm1433_vm1, %v1860_v45  ;;  %2151 = vmatpush.msra.mxu0 %v2132_v43 }
 0x6fc   : > { %v1936_v13 = vld [vmem:[#allocation2 + $0x3] sm:$0xff]  ;;  %2938 = vmatmul.msk.f32.vlgmr.msrb.gmra.mxu3 %vm1433_vm1, %v1898_v46  ;;  %2186 = vmatpush.msra.mxu1 %v2181_v63 }
 0x6fd   : > { %2940 = vmatmul.msk.f32.vlgmr.msrb.gmra.mxu2 %vm1433_vm1, %v1936_v13  ;;  %2152 = vmatpush.msra.mxu0 %v2131_v47  ;;  %v1974_v53 = vld [vmem:[#allocation2 + $0x4] sm:$0xff] }
 0x6fe   : > { %2187 = vmatpush.msra.mxu1 %v2180_v0  ;;  %2248 = vmatpush.msrb.mxu3 %v2225_v27  ;;  %v2223_v63 = vld [vmem:[%s4623_s11 + $0x8] sm:$0xff] }
 0x6ff   : > { %2153 = vmatpush.msra.mxu0 %v2130_v37  ;;  %v2955_v0 = vld [vmem:[%s4623_s11 + $0x28] sm:$0xff] }
 0x700   : > { %2188 = vmatpush.msra.mxu1 %v2179_v1  ;;  %v2963_v1 = vld [vmem:[%s4623_s11 + $0x58] sm:$0xff] }
 0x701   : > { %v1822_v49 = vld [vmem:[#allocation2 + $0x8] sm:$0xff]  ;;  %2154 = vmatpush.msra.mxu0 %v2129_v48  ;;  %v2127_v62 = vld [vmem:[#allocation2 + $0x10] sm:$0xff] }
 0x702   : > { %v1861_v50 = vld [vmem:[#allocation2 + $0x9] sm:$0xff]  ;;  %2935 = vmatmul.msk.f32.gmra.mxu0 %vm1433_vm1, %v1822_v49  ;;  %2189 = vmatpush.msra.mxu1 %v2178_v2  ;;  %v2222_v2 = vld [vmem:[%s4623_s11] sm:$0xff] }
 0x703   : > { %v1899_v51 = vld [vmem:[#allocation2 + $0xa] sm:$0xff]  ;;  %2937 = vmatmul.msk.f32.gmra.mxu1 %vm1433_vm1, %v1861_v50 }
 0x704   : > { %v1937_v52 = vld [vmem:[#allocation2 + $0xb] sm:$0xff]  ;;  %2939 = vmatmul.msk.f32.gmra.mxu3 %vm1433_vm1, %v1899_v51  ;;  %2190 = vmatpush.msra.mxu1 %v2177_v3  ;;  %v2954_v3 = vld [vmem:[%s4623_s11 + $0x20] sm:$0xff] }
 0x705   : > { %v2012_v54 = vld [vmem:[#allocation2 + $0x5] sm:$0xff]  ;;  %2941 = vmatmul.msk.f32.gmra.mxu2 %vm1433_vm1, %v1937_v52  ;;  %v2013_v59 = vld [vmem:[#allocation2 + $0xd] sm:$0xff] }
 0x706   : > { %v2050_v55 = vld [vmem:[#allocation2 + $0x6] sm:$0xff]  ;;  %v2051_v60 = vld [vmem:[#allocation2 + $0xe] sm:$0xff]  ;;  %2191 = vmatpush.msra.mxu1 %v2176_v4 }
 0x707   : > { %v2088_v57 = vld [vmem:[#allocation2 + $0x7] sm:$0xff]  ;;  %v2089_v61 = vld [vmem:[#allocation2 + $0xf] sm:$0xff] }
 0x708   : > { %v1975_v58 = vld [vmem:[#allocation2 + $0xc] sm:$0xff]  ;;  %2214 = vst.msk [vmem:[#allocation2] sm:$0xff] %vm1433_vm1, %v3814_v30  ;;  %2192 = vmatpush.msra.mxu1 %v2175_v5 }
 0x709   : > { %2215 = vst.msk [vmem:[#allocation2 + $0x8] sm:$0xff] %vm1433_vm1, %v3814_v30  ;;  %v2962_v4 = vld [vmem:[%s4623_s11 + $0x50] sm:$0xff]  ;;  %v2961_v5 = vld [vmem:[%s4623_s11 + $0x48] sm:$0xff] }
 0x70a   : > { %2217 = vst.msk [vmem:[#allocation2 + $0x10] sm:$0x3] %vm2216_vm11, %v3814_v30  ;;  %2942 = vmatmul.msk.f32.vlgmr.msrb.gmra.mxu0 %vm1433_vm1, %v1974_v53  ;;  %2193 = vmatpush.msra.mxu1 %v2174_v6  ;;  %v2960_v6 = vld [vmem:[%s4623_s11 + $0x40] sm:$0xff] }
 0x70b   : > { %2944 = vmatmul.msk.f32.vlgmr.msrb.gmra.mxu1 %vm1433_vm1, %v2012_v54  ;;  %2322 = vmatpush.msrb.mxu0 %v2963_v1  ;;  %v2480_v1 = vld [vmem:[#allocation23 + $0x50] sm:$0xff] }
 0x70c   : > { %2946 = vmatmul.msk.f32.vlgmr.msra.gmra.mxu3 %vm1433_vm1, %v2050_v55  ;;  %2194 = vmatpush.msra.mxu1 %v2173_v7  ;;  %v1408_v7 = vld [vmem:[#allocation14] sm:$0x1] }
 0x70d   : > { %2948 = vmatmul.msk.f32.vlgmr.msra.gmra.mxu2 %vm1433_vm1, %v2088_v57  ;;  %2323 = vmatpush.msrb.mxu0 %v2962_v4 }
 0x70e   : > { %2195 = vmatpush.msra.mxu1 %v2172_v8  ;;  %v3213_v8 = vld [vmem:[%s4624_s7] ss:$0 sm:$0xff]  ;;  %s4631_s7 = sld [smem:[#allocation62_spill]] }
 0x70f   : > { %2324 = vmatpush.msrb.mxu0 %v2961_v5  ;;  %v2478_v5 = vld [vmem:[#allocation23 + $0x40] sm:$0xff] }
 0x710   : > { %2196 = vmatpush.msra.mxu1 %v2171_v9  ;;  %v1431_v9 = vadd.f32 %v4342_v56, %v1408_v7 }
 0x711   : > { %2325 = vmatpush.msrb.mxu0 %v2960_v6 }
 0x712   : > { %2943 = vmatmul.msk.f32.gmra.mxu0 %vm1433_vm1, %v1975_v58  ;;  %2197 = vmatpush.msra.mxu1 %v2170_v11 }
 0x713   : > { %2945 = vmatmul.msk.f32.gmra.mxu1 %vm1433_vm1, %v2013_v59 }
 0x714   : > { %2947 = vmatmul.msk.f32.gmra.mxu3 %vm1433_vm1, %v2051_v60  ;;  %2198 = vmatpush.msra.mxu1 %v2169_v14  ;;  %v2957_v60 = vld [vmem:[%s4623_s11 + $0x38] sm:$0xff]  ;;  %v2211_v14 = vperm.slane %v1431_v9, 0 }
 0x715   : > { %2949 = vmatmul.msk.f32.gmra.mxu2 %vm1433_vm1, %v2089_v61  ;;  %v2224_v61 = vld [vmem:[%s4623_s11 + $0x10] sm:$0xff] }
 0x716   : > { %2199 = vmatpush.msra.mxu1 %v2168_v16  ;;  %2284 = vmatpush.msrb.mxu2 %v2957_v60  ;;  %v2401_v60 = vld [vmem:[#allocation23 + $0x8] sm:$0xff] }
 0x717   : > { %2249 = vmatpush.msrb.mxu3 %v2224_v61  ;;  %v2441_v61 = vld [vmem:[#allocation23 + $0x28] sm:$0xff] }
 0x718   : > { %2200 = vmatpush.msra.mxu1 %v2167_v17 }
 0x719   : > { %2250 = vmatpush.msrb.mxu3 %v2223_v63  ;;  %v2400_v63 = vld [vmem:[#allocation23] sm:$0xff] }
 0x71a   : > { %2950 = vmatmul.msk.f32.vlgmr.msra.gmra.mxu0 %vm1433_vm1, %v1822_v49  ;;  %2201 = vmatpush.msra.mxu1 %v2166_v18 }
 0x71b   : > { %2251 = vmatpush.msrb.mxu3 %v2222_v2  ;;  %v2479_v2 = vld [vmem:[#allocation23 + $0x48] sm:$0xff] }
 0x722   : > { %2951 = vmatmul.msk.f32.gmra.mxu0 %vm1433_vm1, %v2127_v62  ;;  %v2956_v62 = vld [vmem:[%s4623_s11 + $0x30] sm:$0xff] }
 0x723   : > { %2285 = vmatpush.msrb.mxu2 %v2956_v62  ;;  %v2481_v62 = vld [vmem:[#allocation23 + $0x58] sm:$0xff] }
 0x724   : > { %2500 = vmatpush.msra.mxu0 %v2481_v62 }
 0x725   : > { %2286 = vmatpush.msrb.mxu2 %v2955_v0  ;;  %v2440_v0 = vld [vmem:[#allocation23 + $0x20] sm:$0xff] }
 0x726   : > { %2501 = vmatpush.msra.mxu0 %v2480_v1  ;;  %v2572_v1 = vld [vmem:[#allocation24 + $0x8] sm:$0xff] }
 0x727   : > { %2287 = vmatpush.msrb.mxu2 %v2954_v3 }
 0x728   : > { %2502 = vmatpush.msra.mxu0 %v2479_v2  ;;  %v2571_v2 = vld [vmem:[#allocation24] sm:$0xff] }
 0x72a   : > { %2503 = vmatpush.msra.mxu0 %v2478_v5 }
 0x777   : > { %v1854_v12 = vpop.f32.mrf.mxu0 }
 0x778   : > { %v1890_v15 = vpop.f32.mrf.mxu1  ;;  %v1855_v23 = vadd.f32 %v3212_v19, %v1854_v12 }
 0x77a   : > { %v1896_v26 = vadd.f32 %v1890_v15, %v1855_v23 }
 0x77f   : > { %v1928_v20 = vpop.f32.mrf.mxu3  ;;  %v1857_v22 = vpop.f32.mrf.mxu0 }
 0x780   : > { %v1966_v21 = vpop.f32.mrf.mxu2  ;;  %v1893_v25 = vpop.f32.mrf.mxu1  ;;  %v1934_v29 = vadd.f32 %v1928_v20, %v1896_v26  ;;  %v1858_v32 = vadd.f32 %v3212_v19, %v1857_v22 }
 0x782   : > { %v1972_v34 = vadd.f32 %v1966_v21, %v1934_v29  ;;  %v1897_v35 = vadd.f32 %v1893_v25, %v1858_v32  ;;  %v3214_v25 = vld [vmem:[%s4625_s10] ss:$0 sm:$0xff]  ;;  %s4632_s10 = sld [smem:[#allocation63_spill]] }
 0x787   : > { %v1931_v10 = vpop.f32.mrf.mxu3  ;;  %v2004_v31 = vpop.f32.mrf.mxu0 }
 0x788   : > { %v1969_v33 = vpop.f32.mrf.mxu2  ;;  %v2010_v38 = vadd.f32 %v2004_v31, %v1972_v34  ;;  %v2042_v39 = vpop.f32.mrf.mxu1  ;;  %v1935_v40 = vadd.f32 %v1931_v10, %v1897_v35 }
 0x78a   : > { %v2048_v43 = vadd.f32 %v2042_v39, %v2010_v38  ;;  %v1973_v44 = vadd.f32 %v1969_v33, %v1935_v40 }
 0x78f   : > { %v2080_v41 = vpop.f32.mrf.mxu3  ;;  %v2007_v42 = vpop.f32.mrf.mxu0 }
 0x790   : > { %v2086_v45 = vadd.f32 %v2080_v41, %v2048_v43  ;;  %v2118_v46 = vpop.f32.mrf.mxu2  ;;  %v2011_v13 = vadd.f32 %v2007_v42, %v1973_v44  ;;  %v2045_v37 = vpop.f32.mrf.mxu1 }
 0x792   : > { %v2124_v47 = vadd.f32 %v2118_v46, %v2086_v45  ;;  %v2049_v50 = vadd.f32 %v2045_v37, %v2011_v13 }
 0x797   : > { %v2083_v48 = vpop.f32.mrf.mxu3  ;;  %v2156_v49 = vpop.f32.mrf.mxu0 }
 0x798   : > { %v2162_v51 = vadd.f32 %v2156_v49, %v2124_v47  ;;  %v2087_v52 = vadd.f32 %v2083_v48, %v2049_v50  ;;  %v2121_v54 = vpop.f32.mrf.mxu2 }
 0x79a   : > { %v2164_v53 = vmax.f32 %v2162_v51, 0.0  ;;  %v2125_v55 = vadd.f32 %v2121_v54, %v2087_v52  ;;  %v2443_v54 = vld [vmem:[#allocation23 + $0x38] sm:$0xff] }
 0x79b   : > { %2462 = vmatpush.msra.mxu2 %v2443_v54 }
 0x79c   : > { %2202 = vmatmul.f32.vlgmr.msra.gmra.mxu1 %v2164_v53  ;;  %v2403_v53 = vld [vmem:[#allocation23 + $0x18] sm:$0xff] }
 0x79d   : > { %2426 = vmatpush.msra.mxu3 %v2403_v53 }
 0x79f   : > { %v2159_v57 = vpop.f32.mrf.mxu0 }
 0x7a0   : > { %v2163_v58 = vadd.f32 %v2159_v57, %v2125_v55  ;;  %v2402_v57 = vld [vmem:[#allocation23 + $0x10] sm:$0xff] }
 0x7a1   : > { %2427 = vmatpush.msra.mxu3 %v2402_v57 }
 0x7a2   : > { %v2165_v59 = vmax.f32 %v2163_v58, 0.0  ;;  %v2442_v58 = vld [vmem:[#allocation23 + $0x30] sm:$0xff] }
 0x7a3   : > { %2463 = vmatpush.msra.mxu2 %v2442_v58  ;;  %2428 = vmatpush.msra.mxu3 %v2401_v60 }
 0x7a4   : > { %2205 = vmatmul.f32.gmra.mxu1 %v2165_v59 }
 0x7a5   : > { %2464 = vmatpush.msra.mxu2 %v2441_v61  ;;  %2429 = vmatpush.msra.mxu3 %v2400_v63  ;;  %v2574_v63 = vld [vmem:[#allocation24 + $0x18] sm:$0xff] }
 0x7a6   : > { %2597 = vmatpush.msrb.mxu1 %v2574_v63 }
 0x7a7   : > { %2465 = vmatpush.msra.mxu2 %v2440_v0  ;;  %v2573_v0 = vld [vmem:[#allocation24 + $0x10] sm:$0xff] }
 0x7a8   : > { %2598 = vmatpush.msrb.mxu1 %v2573_v0 }
 0x7aa   : > { %2599 = vmatpush.msrb.mxu1 %v2572_v1 }
 0x7ac   : > { %2600 = vmatpush.msrb.mxu1 %v2571_v2 }
 0x819   : > { %v2203_v11 = vpop.f32.mrf.mxu1 }
 0x81a   : > { %v2204_v12 = vadd.f32 %v3213_v8, %v2203_v11 }
 0x81c   : > { %v2209_v15 = vadd.f32 %v2204_v12, %v4365_v24 }
 0x81e   : > { %v2212_v16 = vadd.f32 %v2211_v14, %v2209_v15 }
 0x820   : > { %2218 = vst.msk [vmem:[#allocation2 + $0x1] sm:$0xff] %vm1433_vm1, %v2212_v16 }
 0x821   : > { %v2206_v17 = vpop.f32.mrf.mxu1 }
 0x822   : > { %v2207_v18 = vadd.f32 %v3213_v8, %v2206_v17  ;;  %v3215_v17 = vld [vmem:[%s4626_s5] ss:$0 sm:$0xff]  ;;  %s2909_s5 = sshll.u32 %s4267_s18, 4 }
 0x824   : > { %v2210_v19 = vadd.f32 %v2207_v18, %v4370_v28 }
 0x826   : > { %v2213_v20 = vadd.f32 %v2211_v14, %v2210_v19 }
 0x827   : > { %v2220_v21 = vld [vmem:[#allocation2] sm:$0xff] }
 0x828   : > { %v2259_v22 = vld [vmem:[#allocation2 + $0x1] sm:$0xff]  ;;  %2219 = vst.msk [vmem:[#allocation2 + $0x9] sm:$0xff] %vm1433_vm1, %v2213_v20  ;;  %2952 = vmatmul.msk.f32.vlgmr.msrb.gmra.mxu3 %vm1433_vm1, %v2220_v21  ;;  %v3216_v20 = vld [vmem:[%s4627_s3] ss:$0 sm:$0xff]  ;;  %s2981_s3 = sshll.u32 %s4026_s1, 4  ;;  %s3687_s1 = scalar_lea.hbm %s4632_s10, 32 }
 0x829   : > { %2958 = vmatmul.msk.f32.vlgmr.msrb.gmra.mxu2 %vm1433_vm1, %v2259_v22 }
 0x82f   : > { %v2221_v56 = vld [vmem:[#allocation2 + $0x8] sm:$0xff] }
 0x830   : > { %v2260_v23 = vld [vmem:[#allocation2 + $0x9] sm:$0xff]  ;;  %2953 = vmatmul.msk.f32.gmra.mxu3 %vm1433_vm1, %v2221_v56 }
 0x831   : > { %v2297_v24 = vld [vmem:[#allocation2 + $0x2] sm:$0xff]  ;;  %2959 = vmatmul.msk.f32.gmra.mxu2 %vm1433_vm1, %v2260_v23  ;;  %v2298_v28 = vld [vmem:[#allocation2 + $0xa] sm:$0xff] }
 0x832   : > { %2393 = vst.msk [vmem:[#allocation2] sm:$0xff] %vm1433_vm1, %v3814_v30  ;;  %2964 = vmatmul.msk.f32.vlgmr.msrb.gmra.mxu0 %vm1433_vm1, %v2297_v24 }
 0x833   : > { %2395 = vst.msk [vmem:[#allocation2 + $0x10] sm:$0x3] %vm2216_vm11, %v3814_v30 }
 0x834   : > { %2394 = vst.msk [vmem:[#allocation2 + $0x8] sm:$0xff] %vm1433_vm1, %v3814_v30 }
 0x83a   : > { %2965 = vmatmul.msk.f32.gmra.mxu0 %vm1433_vm1, %v2298_v28 }
 0x8ab   : > { %v2253_v26 = vpop.f32.mrf.mxu3 }
 0x8ac   : > { %v2289_v27 = vpop.f32.mrf.mxu2  ;;  %v2254_v29 = vadd.f32 %v3214_v25, %v2253_v26 }
 0x8ae   : > { %v2295_v10 = vadd.f32 %v2289_v27, %v2254_v29 }
 0x8af   : > { %v2327_v31 = vpop.f32.mrf.mxu0 }
 0x8b0   : > { %v2333_v32 = vadd.f32 %v2327_v31, %v2295_v10 }
 0x8b2   : > { %v2335_v33 = vmax.f32 %v2333_v32, 0.0 }
 0x8b3   : > { %v2256_v34 = vpop.f32.mrf.mxu3 }
 0x8b4   : > { %v2257_v35 = vadd.f32 %v3214_v25, %v2256_v34  ;;  %v2337_v38 = vsel %vm1433_vm1, %v2335_v33, 0.0  ;;  %v2292_v39 = vpop.f32.mrf.mxu2 }
 0x8b5   : > { %2338 = vadd.xlane.f32.xlu0 %v2337_v38  ;;  %v3217_v38 = vld [vmem:[%s4628_s4] ss:$0 sm:$0xff]  ;;  %s1318_s4 = scalar_lea.vmem [#allocation26], %s2909_s5 }
 0x8b6   : > { %v2296_v40 = vadd.f32 %v2292_v39, %v2257_v35 }
 0x8b7   : > { %v2330_v41 = vpop.f32.mrf.mxu0 }
 0x8b8   : > { %v2334_v42 = vadd.f32 %v2330_v41, %v2296_v40 }
 0x8ba   : > { %v2336_v30 = vmax.f32 %v2334_v42, 0.0 }
 0x8bc   : > { %v2340_v43 = vsel %vm1433_vm1, %v2336_v30, 0.0 }
 0x8bd   : > { %2341 = vadd.xlane.f32.xlu1 %v2340_v43 }
 0x928   : > { %v2339_v44 = vpop.xlane.xlu0 %2338 }
 0x929   : > { %v2343_v45 = vmul.f32 %v2339_v44, %v4322_v36 }
 0x92b   : > { %v2345_v46 = vsub.f32 %v2335_v33, %v2343_v45 }
 0x92d   : > { %v2347_v13 = vmul.f32 %v2345_v46, %v2345_v46 }
 0x92f   : > { %v2349_v47 = vsel %vm1433_vm1, %v2347_v13, 0.0 }
 0x930   : > { %2350 = vadd.xlane.f32.xlu2 %v2349_v47  ;;  %v2342_v37 = vpop.xlane.xlu1 %2341 }
 0x931   : > { %v2344_v48 = vmul.f32 %v2342_v37, %v4322_v36 }
 0x933   : > { %v4479_v49 = vsub.f32 %v2336_v30, %v2344_v48 }
 0x935   : > { %v2348_v50 = vmul.f32 %v4479_v49, %v4479_v49 }
 0x937   : > { %v2352_v51 = vsel %vm1433_vm1, %v2348_v50, 0.0 }
 0x938   : > { %2353 = vadd.xlane.f32.xlu0 %v2352_v51 }
 0x9a3   : > { %v2351_v52 = vpop.xlane.xlu2 %2350 }
 0x9a4   : > { %v2355_v55 = vmul.f32 %v2351_v52, %v4322_v36 }
 0x9a6   : > { %v2357_v59 = vadd.f32 1e-05, %v2355_v55 }
 0x9a8   : > { %3239 = vrsqrt.f32 %v2357_v59  ;;  %vm2365_vm13 = vweird.f32 %v2357_v59 }
 0x9ab   : > { %v2354_v3 = vpop.xlane.xlu0 %2353 }
 0x9ac   : > { %v2356_v4 = vmul.f32 %v2354_v3, %v4322_v36 }
 0x9ae   : > { %v3240_v6 = vpop.eup %3239  ;;  %v2358_v7 = vadd.f32 1e-05, %v2356_v4 }
 0x9af   : > { %v2360_v8 = vmul.f32 %v3240_v6, %v2357_v59  ;;  %vm2366_vm12 = vweird.f32 %v3240_v6 }
 0x9b0   : > { %3241 = vrsqrt.f32 %v2358_v7  ;;  %vm2367_vm14 = vmor %vm2365_vm13, %vm2366_vm12  ;;  %vm2375_vm0 = vweird.f32 %v2358_v7 }
 0x9b1   : > { %v2361_v9 = vmul.f32 %v3240_v6, %v2360_v8 }
 0x9b3   : > { %v2362_v11 = vmul.f32 0.5, %v2361_v9 }
 0x9b5   : > { %v2363_v12 = vsub.f32 1.5, %v2362_v11 }
 0x9b6   : > { %v3242_v14 = vpop.eup %3241 }
 0x9b7   : > { %v2364_v15 = vmul.f32 %v3240_v6, %v2363_v12  ;;  %v2370_v16 = vmul.f32 %v3242_v14, %v2358_v7  ;;  %vm2376_vm15 = vweird.f32 %v3242_v14 }
 0x9b8   : > { %vm2377_vm2 = vmor %vm2375_vm0, %vm2376_vm15 }
 0x9b9   : > { %v2368_v18 = vsel %vm2367_vm14, %v3240_v6, %v2364_v15  ;;  %v2371_v19 = vmul.f32 %v3242_v14, %v2370_v16 }
 0x9ba   : > { %v2379_v21 = vmul.f32 %v2368_v18, %v2345_v46 }
 0x9bb   : > { %v2372_v22 = vmul.f32 0.5, %v2371_v19  ;;  %v3218_v19 = vld [vmem:[%s4629_s0] ss:$0 sm:$0xff]  ;;  %s2623_s0 = scalar_lea.hbm %s4632_s10, %s2981_s3 }
 0x9bc   : > { %v2385_v56 = vmul.f32 %v3215_v17, %v2379_v21  ;;  %s2626_s6 = sshll.u32 %s2623_s0, 4  ;;  %s2627_s6 = int_to_ptr.hbm [resolvable:$true] %s2626_s6 }
 0x9bd   : > { %v2373_v23 = vsub.f32 1.5, %v2372_v22  ;;  %s3681_s9 = sshra.s32 %s2627_s6, 4  ;;  %s3682_s9 = int_to_ptr.hbm [resolvable:$true] %s3681_s9 }
 0x9be   : > { %v2391_v24 = vadd.f32 %v3216_v20, %v2385_v56  ;;  %p3688_p7 = scmp.lt.s32.totalorder %s3682_s9, %s4632_s10 }
 0x9bf   : > { %v2374_v28 = vmul.f32 %v3242_v14, %v2373_v23 }
 0x9c0   : > { %2396 = vst.msk [vmem:[#allocation2 + $0x1] sm:$0xff] %vm1433_vm1, %v2391_v24 }
 0x9c1   : > { %v2378_v25 = vsel %vm2377_vm2, %v3242_v14, %v2374_v28 }
 0x9c2   : > { %v2380_v26 = vmul.f32 %v2378_v25, %v4479_v49 }
 0x9c4   : > { %v2386_v27 = vmul.f32 %v3215_v17, %v2380_v26 }
 0x9c6   : > { %v2392_v29 = vadd.f32 %v3216_v20, %v2386_v27 }
 0x9c7   : > { %v2398_v10 = vld [vmem:[#allocation2] sm:$0xff] }
 0x9c8   : > { %v2437_v31 = vld [vmem:[#allocation2 + $0x1] sm:$0xff]  ;;  %2397 = vst.msk [vmem:[#allocation2 + $0x9] sm:$0xff] %vm1433_vm1, %v2392_v29  ;;  %2966 = vmatmul.msk.f32.vlgmr.msra.gmra.mxu3 %vm1433_vm1, %v2398_v10 }
 0x9c9   : > { %2968 = vmatmul.msk.f32.vlgmr.msra.gmra.mxu2 %vm1433_vm1, %v2437_v31  ;;  %v3220_v31 = vld [vmem:[%s4631_s7] ss:$0 sm:$0xff]  ;;  %s3683_s7 = scalar_lea.hbm %s3682_s9, 16 }
 0x9ca   : > { %p3684_p3 = scmp.ne.s32.totalorder %s3682_s9, %s3683_s7  ;;  %p3689_p13 = scmp.lt.s32.totalorder %s3687_s1, %s3683_s7 }
 0x9cc   : > { %p3685_p2 = pnand %p3684_p3, %p4242_p6  ;;  %p3690_p9 = por %p3689_p13, %p3688_p7 }
 0x9ce   : > { %p3686_p4 = pneg %p3685_p2 }
 0x9cf   : > { %v2399_v32 = vld [vmem:[#allocation2 + $0x8] sm:$0xff] }
 0x9d0   : > { %v2438_v33 = vld [vmem:[#allocation2 + $0x9] sm:$0xff]  ;;  %2967 = vmatmul.msk.f32.gmra.mxu3 %vm1433_vm1, %v2399_v32  ;;  %p3691_p8 = pnand %p3690_p9, %p3686_p4 }
 0x9d1   : > { %v2475_v34 = vld [vmem:[#allocation2 + $0x2] sm:$0xff]  ;;  %2969 = vmatmul.msk.f32.gmra.mxu2 %vm1433_vm1, %v2438_v33  ;;  %v2476_v35 = vld [vmem:[#allocation2 + $0xa] sm:$0xff] }
 0x9d2   : > { %2970 = vmatmul.msk.f32.vlgmr.msra.gmra.mxu0 %vm1433_vm1, %v2475_v34 }
 0x9da   : > { %2971 = vmatmul.msk.f32.gmra.mxu0 %vm1433_vm1, %v2476_v35 }
 0xa4b   : > { %v2431_v39 = vpop.f32.mrf.mxu3 }
 0xa4c   : > { %v2467_v40 = vpop.f32.mrf.mxu2  ;;  %v2432_v41 = vadd.f32 %v3217_v38, %v2431_v39 }
 0xa4e   : > { %v2473_v42 = vadd.f32 %v2467_v40, %v2432_v41 }
 0xa4f   : > { %v2505_v30 = vpop.f32.mrf.mxu0 }
 0xa50   : > { %v2511_v43 = vadd.f32 %v2505_v30, %v2473_v42 }
 0xa52   : > { %v2513_v44 = vmax.f32 %v2511_v43, 0.0 }
 0xa53   : > { %v2434_v45 = vpop.f32.mrf.mxu3 }
 0xa54   : > { %v2435_v46 = vadd.f32 %v3217_v38, %v2434_v45  ;;  %v2515_v13 = vsel %vm1433_vm1, %v2513_v44, 0.0  ;;  %v2470_v47 = vpop.f32.mrf.mxu2 }
 0xa55   : > { %2516 = vadd.xlane.f32.xlu1 %v2515_v13 }
 0xa56   : > { %v2474_v37 = vadd.f32 %v2470_v47, %v2435_v46 }
 0xa57   : > { %v2508_v48 = vpop.f32.mrf.mxu0 }
 0xa58   : > { %v2512_v49 = vadd.f32 %v2508_v48, %v2474_v37 }
 0xa5a   : > { %v2514_v50 = vmax.f32 %v2512_v49, 0.0 }
 0xa5c   : > { %v2518_v51 = vsel %vm1433_vm1, %v2514_v50, 0.0 }
 0xa5d   : > { %2519 = vadd.xlane.f32.xlu2 %v2518_v51 }
 0xac8   : > { %v2517_v52 = vpop.xlane.xlu1 %2516 }
 0xac9   : > { %v2521_v53 = vmul.f32 %v2517_v52, %v4322_v36 }
 0xacb   : > { %v2523_v54 = vsub.f32 %v2513_v44, %v2521_v53 }
 0xacd   : > { %v2525_v55 = vmul.f32 %v2523_v54, %v2523_v54 }
 0xacf   : > { %v2527_v57 = vsel %vm1433_vm1, %v2525_v55, 0.0 }
 0xad0   : > { %2528 = vadd.xlane.f32.xlu0 %v2527_v57  ;;  %v2520_v58 = vpop.xlane.xlu2 %2519 }
 0xad1   : > { %v2522_v59 = vmul.f32 %v2520_v58, %v4322_v36 }
 0xad3   : > { %v2524_v60 = vsub.f32 %v2514_v50, %v2522_v59 }
 0xad5   : > { %v2526_v61 = vmul.f32 %v2524_v60, %v2524_v60 }
 0xad7   : > { %v2530_v62 = vsel %vm1433_vm1, %v2526_v61, 0.0 }
 0xad8   : > { %2531 = vadd.xlane.f32.xlu1 %v2530_v62 }
 0xb43   : > { %v2529_v3 = vpop.xlane.xlu0 %2528 }
 0xb44   : > { %v2533_v4 = vmul.f32 %v2529_v3, %v4322_v36 }
 0xb46   : > { %v2535_v5 = vadd.f32 1e-05, %v2533_v4 }
 0xb48   : > { %3243 = vrsqrt.f32 %v2535_v5  ;;  %vm2543_vm4 = vweird.f32 %v2535_v5 }
 0xb4b   : > { %v2532_v6 = vpop.xlane.xlu1 %2531 }
 0xb4c   : > { %v2534_v7 = vmul.f32 %v2532_v6, %v4322_v36  ;;  %v3219_v36 = vld [vmem:[%s4630_s30] ss:$0 sm:$0xff]  ;;  %s2624_s30 = sshll.u32 %s1318_s4, 4  ;;  %s2625_s30 = int_to_ptr.vmem [resolvable:$true] %s2624_s30 }
 0xb4e   : > { %v3244_v8 = vpop.eup %3243  ;;  %v2536_v9 = vadd.f32 1e-05, %v2534_v7 }
 0xb4f   : > { %v2538_v11 = vmul.f32 %v3244_v8, %v2535_v5  ;;  %vm2544_vm3 = vweird.f32 %v3244_v8 }
 0xb50   : > { %3245 = vrsqrt.f32 %v2536_v9  ;;  %vm2545_vm5 = vmor %vm2543_vm4, %vm2544_vm3  ;;  %vm2553_vm7 = vweird.f32 %v2536_v9 }
 0xb51   : > { %v2539_v12 = vmul.f32 %v3244_v8, %v2538_v11 }
 0xb53   : > { %v2540_v14 = vmul.f32 0.5, %v2539_v12 }
 0xb55   : > { %v2541_v15 = vsub.f32 1.5, %v2540_v14 }
 0xb56   : > { %v3246_v16 = vpop.eup %3245 }
 0xb57   : > { %v2542_v17 = vmul.f32 %v3244_v8, %v2541_v15  ;;  %v2548_v18 = vmul.f32 %v3246_v16, %v2536_v9  ;;  %vm2554_vm6 = vweird.f32 %v3246_v16 }
 0xb58   : > { %vm2555_vm8 = vmor %vm2553_vm7, %vm2554_vm6 }
 0xb59   : > { %v2546_v20 = vsel %vm2545_vm5, %v3244_v8, %v2542_v17  ;;  %v2549_v21 = vmul.f32 %v3246_v16, %v2548_v18 }
 0xb5a   : > { %v2557_v22 = vmul.f32 %v2546_v20, %v2523_v54 }
 0xb5b   : > { %v2550_v56 = vmul.f32 0.5, %v2549_v21 }
 0xb5c   : > { %v2563_v23 = vmul.f32 %v3218_v19, %v2557_v22 }
 0xb5d   : > { %v2551_v24 = vsub.f32 1.5, %v2550_v56 }
 0xb5e   : > { %v2569_v28 = vadd.f32 %v3219_v36, %v2563_v23 }
 0xb5f   : > { %v2552_v25 = vmul.f32 %v3246_v16, %v2551_v24 }
 0xb60   : > { %2972 = vmatmul.msk.f32.vlgmr.msrb.gmra.mxu1 %vm1433_vm1, %v2569_v28 }
 0xb61   : > { %v2556_v26 = vsel %vm2555_vm8, %v3246_v16, %v2552_v25 }
 0xb62   : > { %v2558_v27 = vmul.f32 %v2556_v26, %v2524_v60 }
 0xb64   : > { %v2564_v29 = vmul.f32 %v3218_v19, %v2558_v27 }
 0xb66   : > { %v2570_v10 = vadd.f32 %v3219_v36, %v2564_v29 }
 0xb68   : > { %2973 = vmatmul.msk.f32.gmra.mxu1 %vm1433_vm1, %v2570_v10 }
 0xbdd   : > { %v2602_v32 = vpop.f32.mrf.mxu1 }
 0xbde   : > { %v2603_v33 = vadd.f32 %v3220_v31, %v2602_v32 }
 0xbe0   : > { %2609 = vst.msk [vmem:[%s1318_s4] sm:$0xff] %vm2608_vm9, %v2603_v33 }
 0xbe5   : > { %v2605_v34 = vpop.f32.mrf.mxu1 }
 0xbe6   : > { %v2606_v35 = vadd.f32 %v3220_v31, %v2605_v34 }
 0xbe8   : > { %2610 = vst.msk [vmem:[%s1318_s4 + $0x8] sm:$0xff] %vm2608_vm9, %v2606_v35 }
 0xbe9   : > { %3694 = shalt.err (!%p3691_p8)
}
 0xbea   : > { %s3815_s5 = smov 128   ;;  %s3816_s3 = smov 8  }
 0xbeb   : > { %3038 = dma.vmem_to_hbm [thread:$0]  (%p4242_p6), %s2625_s30, 256, %s2627_s6, %s2612_s8, %s3815_s5, %s3815_s5, %s3816_s3  }
 0xbec PF: > { %s2641_s18 = sand.u32 1, %s3749_s22   ;;  %p4633_p10 = scmp.ne.s32.totalorder %s4594_s17, 0 }
 0xbed   : > { %p4634_p11 = scmp.ge.s32.totalorder %s3761_s28, 2  ;;  %s2642_s4 = scalar_lea.sflag [#allocation5], %s2641_s18 }
 0xbef   : > { %p3085_p12 = pnand %p4634_p11, %p4633_p10 }
 0xbf1   : > { %p3086_p0 = pneg %p3085_p12 }
 0xbf3   : > { %3744 = dma.done.wait (%p3086_p0), %s2642_s4, 256  }
 0xbf4   : > { %3746 = vsyncadd (%p3086_p0), %s2642_s4, 4294967040  ;;  %p91_p1 = scmp.ge.s32.totalorder %s4222_s15, 4   ;;  %s4635_s22 = smov %s3753_s23 }
 0xbf5   : > { %s4636_s23 = smov %s3757_s26  ;;  %s4637_s26 = smov %s4234_s12 }
 0xbf6   : > { %s4638_s28 = smov %s4222_s15  ;;  %93 = sbr.rel (!%p91_p1) target bundleno = 81 (0x51), region = 310 }
 0xbfb   :  { %2648 = vsyncpa [#allocation4], 1 }
 0xbfc   :  { %2650 = vsyncpa [#allocation4 + $0x1], 1 }
 0xbfd   :  { %2651 = vsyncpa [#allocation7], 1 }
 0xbfe   :  { %2652 = vsyncpa [#allocation10], 1 }
 0xbff   :  { %2653 = vsyncpa [#allocation13], 1 }
 0xc00   :  { %2654 = vsyncpa [#allocation16], 1 }
 0xc01   :  { %2655 = vsyncpa [#allocation19], 1 }
 0xc02   :  { %2656 = vsyncpa [#allocation22], 1 }
 0xc03   :  { %2657 = vsyncpa [#allocation25], 1 }
 0xc04   :  { %2658 = vsyncpa [#allocation5], 1 }
 0xc05   :  { %2660 = vsyncpa [#allocation5 + $0x1], 1 }

</bundles_post_ra>
